<compile_context>
chip_gen: v7x
topology: tpu7x:2x2x1
jax: 0.10.0
libtpu: 0.0.40
codegen_flags: <defaults>
</compile_context>

<pallas_src>
import functools

import jax
import jax.numpy as jnp
from jax.experimental import pallas as pl
from jax.experimental.pallas import tpu as pltpu

# ---------------- small synthetic config ----------------
B, L, H = 2, 16, 32          # batch, seq len, hidden
N_HEADS, D_HEAD = 4, 8       # H = N_HEADS * D_HEAD
INTER = 64                   # FFN intermediate
VOCAB = 64                   # word-embedding vocab
MAX_POS = 32                 # position-embedding table size
N_LAYERS = 2                 # encoder layers
LN_EPS = 1e-12


def _ln(x, g, b, eps=LN_EPS):
    mu = x.mean(-1, keepdims=True)
    var = ((x - mu) ** 2).mean(-1, keepdims=True)
    return (x - mu) * jax.lax.rsqrt(var + eps) * g + b


# ======================================================================
# Fused kernel: graph-mix + embedding LN (layer step 0) + one encoder layer
# per layer grid step, hidden state resident in the output VMEM block.
# ======================================================================
def fused_encoder_kernel(
    attn_ref, amask_ref, tok_ref, nod_ref, emb_ref, pemb_ref,
    type_ref, eg_ref, eb_ref,
    wq_ref, wk_ref, wv_ref, bq_ref, bk_ref, bv_ref,
    wo_ref, bo_ref, l1g_ref, l1b_ref,
    w1_ref, b1_ref, w2_ref, b2_ref, l2g_ref, l2b_ref,
    o_ref, *, n_heads):
    layer = pl.program_id(1)

    # ---- GraphCodeBERT graph-mix + (pos + type emb) + embedding LN ----
    @pl.when(layer == 0)
    def _():
        emb = emb_ref[0]                               # (L, H) f32
        attn = attn_ref[0]                             # (L, L) f32 {0,1}
        mask = attn * tok_ref[0]                       # (L, L) * (1, L) token cols
        denom = mask.sum(axis=-1, keepdims=True)       # (L, 1)
        w = mask * pl.reciprocal(denom + 1e-10, approx=True)
        avg = jnp.dot(w.astype(jnp.bfloat16), emb.astype(jnp.bfloat16),
                      preferred_element_type=jnp.float32)      # (L, H)
        # out[i] = avg[i] if node row else emb[i]  (pure VPU blend)
        mixed = emb + nod_ref[0] * (avg - emb)
        x0 = mixed + pemb_ref[0] + type_ref[...]
        o_ref[0] = _ln(x0, eg_ref[...], eb_ref[...])

    # ---- one encoder layer on the resident hidden state ----
    x = o_ref[0]                                       # (L, H) f32
    x16 = x.astype(jnp.bfloat16)
    amask = amask_ref[0]                               # (L, L) f32 additive

    attn_out = bo_ref[0]                               # (1, H) -> broadcasts
    for hd in range(n_heads):                          # unrolled; heads via
        wq = wq_ref[0, hd]                             # leading-dim ref index
        wk = wk_ref[0, hd]
        wv = wv_ref[0, hd]
        # scale 1/sqrt(d_head) already folded into wq/bq at prep time.
        q = jnp.dot(x16, wq, preferred_element_type=jnp.float32) + bq_ref[0, hd]
        k = jnp.dot(x16, wk, preferred_element_type=jnp.float32) + bk_ref[0, hd]
        v = jnp.dot(x16, wv, preferred_element_type=jnp.float32) + bv_ref[0, hd]
        s = jax.lax.dot_general(
            q.astype(jnp.bfloat16), k.astype(jnp.bfloat16),
            (((1,), (1,)), ((), ())),
            preferred_element_type=jnp.float32) + amask          # (L, L)
        s = s - s.max(axis=-1, keepdims=True)
        p = jnp.exp(s)
        p = p * pl.reciprocal(p.sum(axis=-1, keepdims=True), approx=True)
        ctx = jnp.dot(p.astype(jnp.bfloat16), v.astype(jnp.bfloat16),
                      preferred_element_type=jnp.float32)        # (L, dh)
        # fold output projection per head: no ctx concat / scratch needed
        attn_out = attn_out + jnp.dot(ctx.astype(jnp.bfloat16), wo_ref[0, hd],
                                      preferred_element_type=jnp.float32)

    h1 = _ln(attn_out + x, l1g_ref[0], l1b_ref[0])

    ff = jnp.dot(h1.astype(jnp.bfloat16), w1_ref[0],
                 preferred_element_type=jnp.float32) + b1_ref[0]
    ff = jax.nn.gelu(ff, approximate=True)
    ff2 = jnp.dot(ff.astype(jnp.bfloat16), w2_ref[0],
                  preferred_element_type=jnp.float32) + b2_ref[0]
    o_ref[0] = _ln(ff2 + h1, l2g_ref[0], l2b_ref[0])


def encode(params, stacked, code_inputs, attn_mask, position_idx):
    b, l = position_idx.shape
    h = params["word_emb"].shape[-1]
    nl = stacked["w1"].shape[0]

    # XLA glue: embedding gathers + mask prep (masks are tiny, DMA'd once).
    emb = jnp.take(params["word_emb"], code_inputs, axis=0).astype(jnp.float32)
    pemb = jnp.take(params["pos_emb"], position_idx, axis=0).astype(jnp.float32)
    attn01 = attn_mask.astype(jnp.float32)
    amask = (attn01 - 1.0) * 10000.0                       # additive, precomputed
    tok = (position_idx >= 2).astype(jnp.float32).reshape(b, 1, l)
    nod = (position_idx == 0).astype(jnp.float32).reshape(b, l, 1)

    batch3 = lambda shape: pl.BlockSpec(shape, lambda i, j: (i, 0, 0))
    const2 = lambda shape: pl.BlockSpec(shape, lambda i, j: (0, 0))
    layer3 = lambda shape: pl.BlockSpec(shape, lambda i, j: (j, 0, 0))
    layer4 = lambda shape: pl.BlockSpec(shape, lambda i, j: (j, 0, 0, 0))

    kern = functools.partial(fused_encoder_kernel, n_heads=N_HEADS)

    return pl.pallas_call(
        kern,
        out_shape=jax.ShapeDtypeStruct((b, l, h), jnp.float32),
        grid=(b, nl),
        in_specs=[
            batch3((1, l, l)),                  # attn mask {0,1}
            batch3((1, l, l)),                  # additive attention mask
            batch3((1, 1, l)),                  # token_mask row
            batch3((1, l, 1)),                  # nodes_mask column
            batch3((1, l, h)),                  # gathered word embeddings
            batch3((1, l, h)),                  # gathered position embeddings
            const2((1, h)),                     # token-type embedding
            const2((1, h)),                     # emb LN gamma
            const2((1, h)),                     # emb LN beta
            layer4((1, N_HEADS, h, D_HEAD)),    # Wq (scaled, per head, bf16)
            layer4((1, N_HEADS, h, D_HEAD)),    # Wk
            layer4((1, N_HEADS, h, D_HEAD)),    # Wv
            layer4((1, N_HEADS, 1, D_HEAD)),    # bq (scaled)
            layer4((1, N_HEADS, 1, D_HEAD)),    # bk
            layer4((1, N_HEADS, 1, D_HEAD)),    # bv
            layer4((1, N_HEADS, D_HEAD, h)),    # Wo (per head, bf16)
            layer3((1, 1, h)),                  # bo
            layer3((1, 1, h)),                  # ln1 gamma
            layer3((1, 1, h)),                  # ln1 beta
            layer3((1, h, INTER)),              # W1 (bf16)
            layer3((1, 1, INTER)),              # b1
            layer3((1, INTER, h)),              # W2 (bf16)
            layer3((1, 1, h)),                  # b2
            layer3((1, 1, h)),                  # ln2 gamma
            layer3((1, 1, h)),                  # ln2 beta
        ],
        out_specs=pl.BlockSpec((1, l, h), lambda i, j: (i, 0, 0)),
        compiler_params=pltpu.CompilerParams(
            dimension_semantics=("parallel", "arbitrary")),
    )(attn01, amask, tok, nod, emb, pemb,
      params["type_emb"], params["emb_ln_g"], params["emb_ln_b"],
      stacked["wq"], stacked["wk"], stacked["wv"],
      stacked["bq"], stacked["bk"], stacked["bv"],
      stacked["wo"], stacked["bo"], stacked["ln1_g"], stacked["ln1_b"],
      stacked["w1"], stacked["b1"], stacked["w2"], stacked["b2"],
      stacked["ln2_g"], stacked["ln2_b"])


def model_forward(params, stacked, code_inputs, attn_mask, position_idx):
    h = encode(params, stacked, code_inputs, attn_mask, position_idx)
    # pooler: tanh(W @ h[:, 0] + b) -- tiny (B, H), keep in plain XLA.
    return jnp.tanh(h[:, 0, :] @ params["pool_w"] + params["pool_b"])
    # TODO(synk): nl_inputs branch (same encoder path w/o graph mixing) not exercised.


# ======================================================================
# Parameter prep: stack per-layer weights, split heads, fold 1/sqrt(d_head).
# ======================================================================
def prep_stacked(layers):
    nl = len(layers)
    scale = 1.0 / (D_HEAD ** 0.5)
    stack = lambda name: jnp.stack([lp[name] for lp in layers])

    def heads_w(w):   # (NL, H, H) -> (NL, nH, H, dh)  (split output columns)
        return w.reshape(nl, H, N_HEADS, D_HEAD).transpose(0, 2, 1, 3)

    def heads_b(b):   # (NL, H) -> (NL, nH, 1, dh)
        return b.reshape(nl, N_HEADS, 1, D_HEAD)

    return {
        "wq": heads_w(stack("wq") * scale).astype(jnp.bfloat16),
        "wk": heads_w(stack("wk")).astype(jnp.bfloat16),
        "wv": heads_w(stack("wv")).astype(jnp.bfloat16),
        "bq": heads_b(stack("bq") * scale),
        "bk": heads_b(stack("bk")),
        "bv": heads_b(stack("bv")),
        "wo": stack("wo").reshape(nl, N_HEADS, D_HEAD, H).astype(jnp.bfloat16),
        "bo": stack("bo").reshape(nl, 1, H),
        "ln1_g": stack("ln1_g").reshape(nl, 1, H),
        "ln1_b": stack("ln1_b").reshape(nl, 1, H),
        "w1": stack("w1").astype(jnp.bfloat16),
        "b1": stack("b1").reshape(nl, 1, INTER),
        "w2": stack("w2").astype(jnp.bfloat16),
        "b2": stack("b2").reshape(nl, 1, H),
        "ln2_g": stack("ln2_g").reshape(nl, 1, H),
        "ln2_b": stack("ln2_b").reshape(nl, 1, H),
    }


# ======================================================================
# Deterministic parameter init (weights rounded to bf16 grid, stored f32)
# ======================================================================
def init_params(key):
    def nrm(k, shape, scale=0.02):
        w = scale * jax.random.normal(k, shape, dtype=jnp.float32)
        return w.astype(jnp.bfloat16).astype(jnp.float32)

    keys = iter(jax.random.split(key, 4 + 6 * N_LAYERS))
    params = {
        "word_emb": nrm(next(keys), (VOCAB, H)),
        "pos_emb": nrm(next(keys), (MAX_POS, H)),
        "type_emb": nrm(next(keys), (1, H)),
        "emb_ln_g": jnp.ones((1, H), jnp.float32),
        "emb_ln_b": jnp.zeros((1, H), jnp.float32),
        "pool_w": nrm(next(keys), (H, H)),
        "pool_b": jnp.zeros((H,), jnp.float32),
        "layers": [],
    }
    for _ in range(N_LAYERS):
        params["layers"].append({
            "wq": nrm(next(keys), (H, H)), "bq": jnp.zeros((H,), jnp.float32),
            "wk": nrm(next(keys), (H, H)), "bk": jnp.zeros((H,), jnp.float32),
            "wv": nrm(next(keys), (H, H)), "bv": jnp.zeros((H,), jnp.float32),
            "wo": nrm(next(keys), (H, H)), "bo": jnp.zeros((H,), jnp.float32),
            "ln1_g": jnp.ones((H,), jnp.float32),
            "ln1_b": jnp.zeros((H,), jnp.float32),
            "w1": nrm(next(keys), (H, INTER)),
            "b1": jnp.zeros((INTER,), jnp.float32),
            "w2": nrm(next(keys), (INTER, H)),
            "b2": jnp.zeros((H,), jnp.float32),
            "ln2_g": jnp.ones((H,), jnp.float32),
            "ln2_b": jnp.zeros((H,), jnp.float32),
        })
    return params


# ======================================================================
# Pure-JAX reference (f32) matching Model.forward (code_inputs branch)
# ======================================================================
def reference_encode(params, code_inputs, attn_mask, position_idx):
    emb = jnp.take(params["word_emb"], code_inputs, axis=0)
    pemb = jnp.take(params["pos_emb"], position_idx, axis=0)
    nodes = (position_idx == 0)
    tokens = (position_idx >= 2)
    m = (nodes[:, :, None] & tokens[:, None, :]).astype(jnp.float32) * attn_mask
    m = m / (m.sum(-1, keepdims=True) + 1e-10)
    avg = jnp.einsum("abc,acd->abd", m, emb)
    nod = nodes[:, :, None].astype(jnp.float32)
    mixed = emb * (1.0 - nod) + avg * nod
    h = _ln(mixed + pemb + params["type_emb"],
            params["emb_ln_g"], params["emb_ln_b"])

    add_mask = (attn_mask - 1.0) * 10000.0
    scale = 1.0 / (D_HEAD ** 0.5)
    bsz, l, d = h.shape
    for lp in params["layers"]:
        q = h @ lp["wq"] + lp["bq"]
        k = h @ lp["wk"] + lp["bk"]
        v = h @ lp["wv"] + lp["bv"]
        split = lambda t: t.reshape(bsz, l, N_HEADS, D_HEAD).transpose(0, 2, 1, 3)
        s = jnp.einsum("bhqd,bhkd->bhqk", split(q), split(k)) * scale
        s = s + add_mask[:, None]
        p = jax.nn.softmax(s, axis=-1)
        ctx = jnp.einsum("bhqk,bhkd->bhqd", p, split(v))
        ctx = ctx.transpose(0, 2, 1, 3).reshape(bsz, l, d)
        attn_out = ctx @ lp["wo"] + lp["bo"]
        h1 = _ln(attn_out + h, lp["ln1_g"], lp["ln1_b"])
        ff = jax.nn.gelu(h1 @ lp["w1"] + lp["b1"], approximate=True)
        h = _ln(ff @ lp["w2"] + lp["b2"] + h1, lp["ln2_g"], lp["ln2_b"])
    return h


# ======================================================================
if __name__ == "__main__":
    root = jax.random.PRNGKey(0)
    k_par, k_ids, k_mask = jax.random.split(root, 3)

    params = init_params(k_par)
    stacked = prep_stacked(params["layers"])

    # code token ids
    code_inputs = jax.random.randint(k_ids, (B, L), 0, VOCAB, dtype=jnp.int32)

    # position_idx: tokens get positions >= 2, DFG nodes get 0, padding gets 1
    base = jnp.concatenate([
        jnp.arange(2, 12, dtype=jnp.int32),        # 10 code tokens
        jnp.zeros((4,), jnp.int32),                # 4 graph nodes
        jnp.ones((2,), jnp.int32),                 # 2 pad
    ])
    position_idx = jnp.stack([base, base], axis=0)  # (B, L)

    # attention mask (B, L, L), {0,1}, diagonal forced on
    attn_mask = jax.random.bernoulli(k_mask, 0.8, (B, L, L)).astype(jnp.float32)
    attn_mask = jnp.maximum(attn_mask, jnp.eye(L, dtype=jnp.float32)[None])

    # ---- fused kernel: graph mix + emb LN + both encoder layers ----
    h = encode(params, stacked, code_inputs, attn_mask, position_idx)
    h = jax.block_until_ready(h)
    assert h.shape == (B, L, H)
    assert bool(jnp.all(jnp.isfinite(h)))

    # ---- correctness vs pure-JAX f32 reference (bf16/approx-recip tolerance) ----
    ref_h = reference_encode(params, code_inputs, attn_mask, position_idx)
    max_err = float(jnp.max(jnp.abs(h - ref_h)))
    assert jnp.allclose(h, ref_h, atol=7.5e-2, rtol=7.5e-2), max_err

    # ---- pooler (plain XLA) ----
    pooled = jnp.tanh(h[:, 0, :] @ params["pool_w"] + params["pool_b"])
    pooled = jax.block_until_ready(pooled)
    assert pooled.shape == (B, H)
    assert bool(jnp.all(jnp.isfinite(pooled)))
    print("KERNEL_OK")
</pallas_src>

<mosaic_0001>
module attributes {stable_mosaic.version = 11 : i64} {
  func.func @fused_encoder_kernel(%arg0: i32, %arg1: i32, %arg2: memref<1x16x16xf32, #tpu.memory_space<vmem>>, %arg3: memref<1x16x16xf32, #tpu.memory_space<vmem>>, %arg4: memref<1x1x16xf32, #tpu.memory_space<vmem>>, %arg5: memref<1x16x1xf32, #tpu.memory_space<vmem>>, %arg6: memref<1x16x32xf32, #tpu.memory_space<vmem>>, %arg7: memref<1x16x32xf32, #tpu.memory_space<vmem>>, %arg8: memref<1x32xf32, #tpu.memory_space<vmem>>, %arg9: memref<1x32xf32, #tpu.memory_space<vmem>>, %arg10: memref<1x32xf32, #tpu.memory_space<vmem>>, %arg11: memref<1x4x32x8xbf16, #tpu.memory_space<vmem>>, %arg12: memref<1x4x32x8xbf16, #tpu.memory_space<vmem>>, %arg13: memref<1x4x32x8xbf16, #tpu.memory_space<vmem>>, %arg14: memref<1x4x1x8xf32, #tpu.memory_space<vmem>>, %arg15: memref<1x4x1x8xf32, #tpu.memory_space<vmem>>, %arg16: memref<1x4x1x8xf32, #tpu.memory_space<vmem>>, %arg17: memref<1x4x8x32xbf16, #tpu.memory_space<vmem>>, %arg18: memref<1x1x32xf32, #tpu.memory_space<vmem>>, %arg19: memref<1x1x32xf32, #tpu.memory_space<vmem>>, %arg20: memref<1x1x32xf32, #tpu.memory_space<vmem>>, %arg21: memref<1x32x64xbf16, #tpu.memory_space<vmem>>, %arg22: memref<1x1x64xf32, #tpu.memory_space<vmem>>, %arg23: memref<1x64x32xbf16, #tpu.memory_space<vmem>>, %arg24: memref<1x1x32xf32, #tpu.memory_space<vmem>>, %arg25: memref<1x1x32xf32, #tpu.memory_space<vmem>>, %arg26: memref<1x1x32xf32, #tpu.memory_space<vmem>>, %arg27: memref<1x16x32xf32, #tpu.memory_space<vmem>>) attributes {dimension_semantics = [#tpu.dimension_semantics<parallel>, #tpu.dimension_semantics<arbitrary>], iteration_bounds = array<i64: 2, 2>, scalar_prefetch = 0 : i64, scratch_operands = 0 : i64, tpu.core_type = #tpu.core_type<tc>, window_params = [{transform_indices = @transform_0, window_bounds = array<i64: 1, 16, 16>}, {transform_indices = @transform_1, window_bounds = array<i64: 1, 16, 16>}, {transform_indices = @transform_2, window_bounds = array<i64: 1, 1, 16>}, {transform_indices = @transform_3, window_bounds = array<i64: 1, 16, 1>}, {transform_indices = @transform_4, window_bounds = array<i64: 1, 16, 32>}, {transform_indices = @transform_5, window_bounds = array<i64: 1, 16, 32>}, {pipeline_mode = #tpu.pipeline_mode<synchronous>, transform_indices = @transform_6, window_bounds = array<i64: 1, 32>}, {pipeline_mode = #tpu.pipeline_mode<synchronous>, transform_indices = @transform_7, window_bounds = array<i64: 1, 32>}, {pipeline_mode = #tpu.pipeline_mode<synchronous>, transform_indices = @transform_8, window_bounds = array<i64: 1, 32>}, {transform_indices = @transform_9, window_bounds = array<i64: 1, 4, 32, 8>}, {transform_indices = @transform_10, window_bounds = array<i64: 1, 4, 32, 8>}, {transform_indices = @transform_11, window_bounds = array<i64: 1, 4, 32, 8>}, {transform_indices = @transform_12, window_bounds = array<i64: 1, 4, 1, 8>}, {transform_indices = @transform_13, window_bounds = array<i64: 1, 4, 1, 8>}, {transform_indices = @transform_14, window_bounds = array<i64: 1, 4, 1, 8>}, {transform_indices = @transform_15, window_bounds = array<i64: 1, 4, 8, 32>}, {transform_indices = @transform_16, window_bounds = array<i64: 1, 1, 32>}, {transform_indices = @transform_17, window_bounds = array<i64: 1, 1, 32>}, {transform_indices = @transform_18, window_bounds = array<i64: 1, 1, 32>}, {transform_indices = @transform_19, window_bounds = array<i64: 1, 32, 64>}, {transform_indices = @transform_20, window_bounds = array<i64: 1, 1, 64>}, {transform_indices = @transform_21, window_bounds = array<i64: 1, 64, 32>}, {transform_indices = @transform_22, window_bounds = array<i64: 1, 1, 32>}, {transform_indices = @transform_23, window_bounds = array<i64: 1, 1, 32>}, {transform_indices = @transform_24, window_bounds = array<i64: 1, 1, 32>}, {transform_indices = @transform_25, window_bounds = array<i64: 1, 16, 32>}]} {
    %c0_i32 = arith.constant 0 : i32
    %0 = arith.cmpi eq, %arg1, %c0_i32 : i32
    %1 = arith.extui %0 : i1 to i32
    %c0_i32_0 = arith.constant 0 : i32
    %2 = arith.cmpi ne, %1, %c0_i32_0 : i32
    scf.if %2 {
      %c0_192 = arith.constant 0 : index
      %c0_193 = arith.constant 0 : index
      %c0_194 = arith.constant 0 : index
      %269 = vector.load %arg6[%c0_192, %c0_193, %c0_194] : memref<1x16x32xf32, #tpu.memory_space<vmem>>, vector<1x16x32xf32>
      %270 = vector.shape_cast %269 : vector<1x16x32xf32> to vector<16x32xf32>
      %c0_195 = arith.constant 0 : index
      %c0_196 = arith.constant 0 : index
      %c0_197 = arith.constant 0 : index
      %271 = vector.load %arg2[%c0_195, %c0_196, %c0_197] : memref<1x16x16xf32, #tpu.memory_space<vmem>>, vector<1x16x16xf32>
      %272 = vector.shape_cast %271 : vector<1x16x16xf32> to vector<16x16xf32>
      %c0_198 = arith.constant 0 : index
      %c0_199 = arith.constant 0 : index
      %c0_200 = arith.constant 0 : index
      %273 = vector.load %arg4[%c0_198, %c0_199, %c0_200] : memref<1x1x16xf32, #tpu.memory_space<vmem>>, vector<1x1x16xf32>
      %274 = vector.shape_cast %273 : vector<1x1x16xf32> to vector<1x16xf32>
      %275 = vector.broadcast %274 : vector<1x16xf32> to vector<16x16xf32>
      %276 = arith.mulf %272, %275 : vector<16x16xf32>
      %cst_201 = arith.constant dense<0.000000e+00> : vector<16xf32>
      %277 = vector.multi_reduction <add>, %276, %cst_201 [1] : vector<16x16xf32> to vector<16xf32>
      %278 = vector.shape_cast %277 : vector<16xf32> to vector<16x1xf32>
      %cst_202 = arith.constant 1.000000e-10 : f32
      %279 = vector.broadcast %cst_202 : f32 to vector<16x1xf32>
      %280 = arith.addf %278, %279 : vector<16x1xf32>
      %281 = tpu.reciprocal %280 {approx = true} : vector<16x1xf32> -> vector<16x1xf32>
      %282 = vector.broadcast %281 : vector<16x1xf32> to vector<16x16xf32>
      %283 = arith.mulf %276, %282 : vector<16x16xf32>
      %284 = arith.truncf %283 : vector<16x16xf32> to vector<16x16xbf16>
      %285 = arith.truncf %270 : vector<16x32xf32> to vector<16x32xbf16>
      %cst_203 = arith.constant dense<0.000000e+00> : vector<16x32xf32>
      %286 = tpu.matmul %284, %285, %cst_203 {dimension_numbers = #tpu.dot_dimension_numbers<[1], [0], [0], [1], [0, 0, 1, 1], [], []>} : vector<16x16xbf16>, vector<16x32xbf16>, vector<16x32xf32> -> vector<16x32xf32>
      %c0_204 = arith.constant 0 : index
      %c0_205 = arith.constant 0 : index
      %c0_206 = arith.constant 0 : index
      %287 = vector.load %arg5[%c0_204, %c0_205, %c0_206] : memref<1x16x1xf32, #tpu.memory_space<vmem>>, vector<1x16x1xf32>
      %288 = vector.shape_cast %287 : vector<1x16x1xf32> to vector<16x1xf32>
      %289 = arith.subf %286, %270 : vector<16x32xf32>
      %290 = vector.broadcast %288 : vector<16x1xf32> to vector<16x32xf32>
      %291 = arith.mulf %290, %289 : vector<16x32xf32>
      %292 = arith.addf %270, %291 : vector<16x32xf32>
      %c0_207 = arith.constant 0 : index
      %c0_208 = arith.constant 0 : index
      %c0_209 = arith.constant 0 : index
      %293 = vector.load %arg7[%c0_207, %c0_208, %c0_209] : memref<1x16x32xf32, #tpu.memory_space<vmem>>, vector<1x16x32xf32>
      %294 = vector.shape_cast %293 : vector<1x16x32xf32> to vector<16x32xf32>
      %295 = arith.addf %292, %294 : vector<16x32xf32>
      %c0_210 = arith.constant 0 : index
      %c0_211 = arith.constant 0 : index
      %296 = vector.load %arg8[%c0_210, %c0_211] : memref<1x32xf32, #tpu.memory_space<vmem>>, vector<1x32xf32>
      %297 = vector.broadcast %296 : vector<1x32xf32> to vector<16x32xf32>
      %298 = arith.addf %295, %297 : vector<16x32xf32>
      %c0_212 = arith.constant 0 : index
      %c0_213 = arith.constant 0 : index
      %299 = vector.load %arg9[%c0_212, %c0_213] : memref<1x32xf32, #tpu.memory_space<vmem>>, vector<1x32xf32>
      %c0_214 = arith.constant 0 : index
      %c0_215 = arith.constant 0 : index
      %300 = vector.load %arg10[%c0_214, %c0_215] : memref<1x32xf32, #tpu.memory_space<vmem>>, vector<1x32xf32>
      %cst_216 = arith.constant dense<0.000000e+00> : vector<16xf32>
      %301 = vector.multi_reduction <add>, %298, %cst_216 [1] : vector<16x32xf32> to vector<16xf32>
      %302 = vector.shape_cast %301 : vector<16xf32> to vector<16x1xf32>
      %cst_217 = arith.constant 3.200000e+01 : f32
      %303 = vector.broadcast %cst_217 : f32 to vector<16x1xf32>
      %304 = arith.divf %302, %303 : vector<16x1xf32>
      %305 = vector.broadcast %304 : vector<16x1xf32> to vector<16x32xf32>
      %306 = arith.subf %298, %305 : vector<16x32xf32>
      %307 = arith.mulf %306, %306 : vector<16x32xf32>
      %cst_218 = arith.constant dense<0.000000e+00> : vector<16xf32>
      %308 = vector.multi_reduction <add>, %307, %cst_218 [1] : vector<16x32xf32> to vector<16xf32>
      %309 = vector.shape_cast %308 : vector<16xf32> to vector<16x1xf32>
      %cst_219 = arith.constant 3.200000e+01 : f32
      %310 = vector.broadcast %cst_219 : f32 to vector<16x1xf32>
      %311 = arith.divf %309, %310 : vector<16x1xf32>
      %312 = vector.broadcast %304 : vector<16x1xf32> to vector<16x32xf32>
      %313 = arith.subf %298, %312 : vector<16x32xf32>
      %cst_220 = arith.constant 9.99999996E-13 : f32
      %314 = vector.broadcast %cst_220 : f32 to vector<16x1xf32>
      %315 = arith.addf %311, %314 : vector<16x1xf32>
      %316 = math.rsqrt %315 : vector<16x1xf32>
      %317 = vector.broadcast %316 : vector<16x1xf32> to vector<16x32xf32>
      %318 = arith.mulf %313, %317 : vector<16x32xf32>
      %319 = vector.broadcast %299 : vector<1x32xf32> to vector<16x32xf32>
      %320 = arith.mulf %318, %319 : vector<16x32xf32>
      %321 = vector.broadcast %300 : vector<1x32xf32> to vector<16x32xf32>
      %322 = arith.addf %320, %321 : vector<16x32xf32>
      %c0_221 = arith.constant 0 : index
      %c0_222 = arith.constant 0 : index
      %c0_223 = arith.constant 0 : index
      %323 = vector.load %arg27[%c0_221, %c0_222, %c0_223] : memref<1x16x32xf32, #tpu.memory_space<vmem>>, vector<1x16x32xf32>
      %324 = vector.shape_cast %323 : vector<1x16x32xf32> to vector<16x32xf32>
      %325 = vector.shape_cast %322 : vector<16x32xf32> to vector<1x16x32xf32>
      tpu.vector_store %arg27[%c0_221, %c0_222, %c0_223], %325 {strides = array<i32>} : memref<1x16x32xf32, #tpu.memory_space<vmem>>, vector<1x16x32xf32>,
    } else {
    }
    %c0 = arith.constant 0 : index
    %c0_1 = arith.constant 0 : index
    %c0_2 = arith.constant 0 : index
    %3 = vector.load %arg27[%c0, %c0_1, %c0_2] : memref<1x16x32xf32, #tpu.memory_space<vmem>>, vector<1x16x32xf32>
    %4 = vector.shape_cast %3 : vector<1x16x32xf32> to vector<16x32xf32>
    %5 = arith.truncf %4 : vector<16x32xf32> to vector<16x32xbf16>
    %c0_3 = arith.constant 0 : index
    %c0_4 = arith.constant 0 : index
    %c0_5 = arith.constant 0 : index
    %6 = vector.load %arg3[%c0_3, %c0_4, %c0_5] : memref<1x16x16xf32, #tpu.memory_space<vmem>>, vector<1x16x16xf32>
    %7 = vector.shape_cast %6 : vector<1x16x16xf32> to vector<16x16xf32>
    %c0_6 = arith.constant 0 : index
    %c0_7 = arith.constant 0 : index
    %c0_8 = arith.constant 0 : index
    %8 = vector.load %arg18[%c0_6, %c0_7, %c0_8] : memref<1x1x32xf32, #tpu.memory_space<vmem>>, vector<1x1x32xf32>
    %9 = vector.shape_cast %8 : vector<1x1x32xf32> to vector<1x32xf32>
    %c0_9 = arith.constant 0 : index
    %c0_10 = arith.constant 0 : index
    %c0_11 = arith.constant 0 : index
    %c0_12 = arith.constant 0 : index
    %10 = vector.load %arg11[%c0_9, %c0_10, %c0_11, %c0_12] : memref<1x4x32x8xbf16, #tpu.memory_space<vmem>>, vector<1x1x32x8xbf16>
    %11 = vector.shape_cast %10 : vector<1x1x32x8xbf16> to vector<32x8xbf16>
    %c0_13 = arith.constant 0 : index
    %c0_14 = arith.constant 0 : index
    %c0_15 = arith.constant 0 : index
    %c0_16 = arith.constant 0 : index
    %12 = vector.load %arg12[%c0_13, %c0_14, %c0_15, %c0_16] : memref<1x4x32x8xbf16, #tpu.memory_space<vmem>>, vector<1x1x32x8xbf16>
    %13 = vector.shape_cast %12 : vector<1x1x32x8xbf16> to vector<32x8xbf16>
    %c0_17 = arith.constant 0 : index
    %c0_18 = arith.constant 0 : index
    %c0_19 = arith.constant 0 : index
    %c0_20 = arith.constant 0 : index
    %14 = vector.load %arg13[%c0_17, %c0_18, %c0_19, %c0_20] : memref<1x4x32x8xbf16, #tpu.memory_space<vmem>>, vector<1x1x32x8xbf16>
    %15 = vector.shape_cast %14 : vector<1x1x32x8xbf16> to vector<32x8xbf16>
    %cst = arith.constant dense<0.000000e+00> : vector<16x8xf32>
    %16 = tpu.matmul %5, %11, %cst {dimension_numbers = #tpu.dot_dimension_numbers<[1], [0], [0], [1], [0, 0, 1, 1], [], []>} : vector<16x32xbf16>, vector<32x8xbf16>, vector<16x8xf32> -> vector<16x8xf32>
    %c0_21 = arith.constant 0 : index
    %c0_22 = arith.constant 0 : index
    %c0_23 = arith.constant 0 : index
    %c0_24 = arith.constant 0 : index
    %17 = vector.load %arg14[%c0_21, %c0_22, %c0_23, %c0_24] : memref<1x4x1x8xf32, #tpu.memory_space<vmem>>, vector<1x1x1x8xf32>
    %18 = vector.shape_cast %17 : vector<1x1x1x8xf32> to vector<1x8xf32>
    %19 = vector.broadcast %18 : vector<1x8xf32> to vector<16x8xf32>
    %20 = arith.addf %16, %19 : vector<16x8xf32>
    %cst_25 = arith.constant dense<0.000000e+00> : vector<16x8xf32>
    %21 = tpu.matmul %5, %13, %cst_25 {dimension_numbers = #tpu.dot_dimension_numbers<[1], [0], [0], [1], [0, 0, 1, 1], [], []>} : vector<16x32xbf16>, vector<32x8xbf16>, vector<16x8xf32> -> vector<16x8xf32>
    %c0_26 = arith.constant 0 : index
    %c0_27 = arith.constant 0 : index
    %c0_28 = arith.constant 0 : index
    %c0_29 = arith.constant 0 : index
    %22 = vector.load %arg15[%c0_26, %c0_27, %c0_28, %c0_29] : memref<1x4x1x8xf32, #tpu.memory_space<vmem>>, vector<1x1x1x8xf32>
    %23 = vector.shape_cast %22 : vector<1x1x1x8xf32> to vector<1x8xf32>
    %24 = vector.broadcast %23 : vector<1x8xf32> to vector<16x8xf32>
    %25 = arith.addf %21, %24 : vector<16x8xf32>
    %cst_30 = arith.constant dense<0.000000e+00> : vector<16x8xf32>
    %26 = tpu.matmul %5, %15, %cst_30 {dimension_numbers = #tpu.dot_dimension_numbers<[1], [0], [0], [1], [0, 0, 1, 1], [], []>} : vector<16x32xbf16>, vector<32x8xbf16>, vector<16x8xf32> -> vector<16x8xf32>
    %c0_31 = arith.constant 0 : index
    %c0_32 = arith.constant 0 : index
    %c0_33 = arith.constant 0 : index
    %c0_34 = arith.constant 0 : index
    %27 = vector.load %arg16[%c0_31, %c0_32, %c0_33, %c0_34] : memref<1x4x1x8xf32, #tpu.memory_space<vmem>>, vector<1x1x1x8xf32>
    %28 = vector.shape_cast %27 : vector<1x1x1x8xf32> to vector<1x8xf32>
    %29 = vector.broadcast %28 : vector<1x8xf32> to vector<16x8xf32>
    %30 = arith.addf %26, %29 : vector<16x8xf32>
    %31 = arith.truncf %20 : vector<16x8xf32> to vector<16x8xbf16>
    %32 = arith.truncf %25 : vector<16x8xf32> to vector<16x8xbf16>
    %cst_35 = arith.constant dense<0.000000e+00> : vector<16x16xf32>
    %33 = tpu.matmul %31, %32, %cst_35 {dimension_numbers = #tpu.dot_dimension_numbers<[1], [1], [0], [0], [0, 0, 1, 0], [], []>} : vector<16x8xbf16>, vector<16x8xbf16>, vector<16x16xf32> -> vector<16x16xf32>
    %34 = arith.addf %33, %7 : vector<16x16xf32>
    %cst_36 = arith.constant dense<0xFF800000> : vector<16xf32>
    %35 = vector.multi_reduction <maximumf>, %34, %cst_36 [1] : vector<16x16xf32> to vector<16xf32>
    %36 = vector.shape_cast %35 : vector<16xf32> to vector<16x1xf32>
    %37 = vector.broadcast %36 : vector<16x1xf32> to vector<16x16xf32>
    %38 = arith.subf %34, %37 : vector<16x16xf32>
    %39 = math.exp %38 : vector<16x16xf32>
    %cst_37 = arith.constant dense<0.000000e+00> : vector<16xf32>
    %40 = vector.multi_reduction <add>, %39, %cst_37 [1] : vector<16x16xf32> to vector<16xf32>
    %41 = vector.shape_cast %40 : vector<16xf32> to vector<16x1xf32>
    %42 = tpu.reciprocal %41 {approx = true} : vector<16x1xf32> -> vector<16x1xf32>
    %43 = vector.broadcast %42 : vector<16x1xf32> to vector<16x16xf32>
    %44 = arith.mulf %39, %43 : vector<16x16xf32>
    %45 = arith.truncf %44 : vector<16x16xf32> to vector<16x16xbf16>
    %46 = arith.truncf %30 : vector<16x8xf32> to vector<16x8xbf16>
    %cst_38 = arith.constant dense<0.000000e+00> : vector<16x8xf32>
    %47 = tpu.matmul %45, %46, %cst_38 {dimension_numbers = #tpu.dot_dimension_numbers<[1], [0], [0], [1], [0, 0, 1, 1], [], []>} : vector<16x16xbf16>, vector<16x8xbf16>, vector<16x8xf32> -> vector<16x8xf32>
    %48 = arith.truncf %47 : vector<16x8xf32> to vector<16x8xbf16>
    %c0_39 = arith.constant 0 : index
    %c0_40 = arith.constant 0 : index
    %c0_41 = arith.constant 0 : index
    %c0_42 = arith.constant 0 : index
    %49 = vector.load %arg17[%c0_39, %c0_40, %c0_41, %c0_42] : memref<1x4x8x32xbf16, #tpu.memory_space<vmem>>, vector<1x1x8x32xbf16>
    %50 = vector.shape_cast %49 : vector<1x1x8x32xbf16> to vector<8x32xbf16>
    %cst_43 = arith.constant dense<0.000000e+00> : vector<16x32xf32>
    %51 = tpu.matmul %48, %50, %cst_43 {dimension_numbers = #tpu.dot_dimension_numbers<[1], [0], [0], [1], [0, 0, 1, 1], [], []>} : vector<16x8xbf16>, vector<8x32xbf16>, vector<16x32xf32> -> vector<16x32xf32>
    %52 = vector.broadcast %9 : vector<1x32xf32> to vector<16x32xf32>
    %53 = arith.addf %52, %51 : vector<16x32xf32>
    %c0_44 = arith.constant 0 : index
    %c1 = arith.constant 1 : index
    %c0_45 = arith.constant 0 : index
    %c0_46 = arith.constant 0 : index
    %54 = vector.load %arg11[%c0_44, %c1, %c0_45, %c0_46] : memref<1x4x32x8xbf16, #tpu.memory_space<vmem>>, vector<1x1x32x8xbf16>
    %55 = vector.shape_cast %54 : vector<1x1x32x8xbf16> to vector<32x8xbf16>
    %c0_47 = arith.constant 0 : index
    %c1_48 = arith.constant 1 : index
    %c0_49 = arith.constant 0 : index
    %c0_50 = arith.constant 0 : index
    %56 = vector.load %arg12[%c0_47, %c1_48, %c0_49, %c0_50] : memref<1x4x32x8xbf16, #tpu.memory_space<vmem>>, vector<1x1x32x8xbf16>
    %57 = vector.shape_cast %56 : vector<1x1x32x8xbf16> to vector<32x8xbf16>
    %c0_51 = arith.constant 0 : index
    %c1_52 = arith.constant 1 : index
    %c0_53 = arith.constant 0 : index
    %c0_54 = arith.constant 0 : index
    %58 = vector.load %arg13[%c0_51, %c1_52, %c0_53, %c0_54] : memref<1x4x32x8xbf16, #tpu.memory_space<vmem>>, vector<1x1x32x8xbf16>
    %59 = vector.shape_cast %58 : vector<1x1x32x8xbf16> to vector<32x8xbf16>
    %cst_55 = arith.constant dense<0.000000e+00> : vector<16x8xf32>
    %60 = tpu.matmul %5, %55, %cst_55 {dimension_numbers = #tpu.dot_dimension_numbers<[1], [0], [0], [1], [0, 0, 1, 1], [], []>} : vector<16x32xbf16>, vector<32x8xbf16>, vector<16x8xf32> -> vector<16x8xf32>
    %c0_56 = arith.constant 0 : index
    %c1_57 = arith.constant 1 : index
    %c0_58 = arith.constant 0 : index
    %c0_59 = arith.constant 0 : index
    %61 = vector.load %arg14[%c0_56, %c1_57, %c0_58, %c0_59] : memref<1x4x1x8xf32, #tpu.memory_space<vmem>>, vector<1x1x1x8xf32>
    %62 = vector.shape_cast %61 : vector<1x1x1x8xf32> to vector<1x8xf32>
    %63 = vector.broadcast %62 : vector<1x8xf32> to vector<16x8xf32>
    %64 = arith.addf %60, %63 : vector<16x8xf32>
    %cst_60 = arith.constant dense<0.000000e+00> : vector<16x8xf32>
    %65 = tpu.matmul %5, %57, %cst_60 {dimension_numbers = #tpu.dot_dimension_numbers<[1], [0], [0], [1], [0, 0, 1, 1], [], []>} : vector<16x32xbf16>, vector<32x8xbf16>, vector<16x8xf32> -> vector<16x8xf32>
    %c0_61 = arith.constant 0 : index
    %c1_62 = arith.constant 1 : index
    %c0_63 = arith.constant 0 : index
    %c0_64 = arith.constant 0 : index
    %66 = vector.load %arg15[%c0_61, %c1_62, %c0_63, %c0_64] : memref<1x4x1x8xf32, #tpu.memory_space<vmem>>, vector<1x1x1x8xf32>
    %67 = vector.shape_cast %66 : vector<1x1x1x8xf32> to vector<1x8xf32>
    %68 = vector.broadcast %67 : vector<1x8xf32> to vector<16x8xf32>
    %69 = arith.addf %65, %68 : vector<16x8xf32>
    %cst_65 = arith.constant dense<0.000000e+00> : vector<16x8xf32>
    %70 = tpu.matmul %5, %59, %cst_65 {dimension_numbers = #tpu.dot_dimension_numbers<[1], [0], [0], [1], [0, 0, 1, 1], [], []>} : vector<16x32xbf16>, vector<32x8xbf16>, vector<16x8xf32> -> vector<16x8xf32>
    %c0_66 = arith.constant 0 : index
    %c1_67 = arith.constant 1 : index
    %c0_68 = arith.constant 0 : index
    %c0_69 = arith.constant 0 : index
    %71 = vector.load %arg16[%c0_66, %c1_67, %c0_68, %c0_69] : memref<1x4x1x8xf32, #tpu.memory_space<vmem>>, vector<1x1x1x8xf32>
    %72 = vector.shape_cast %71 : vector<1x1x1x8xf32> to vector<1x8xf32>
    %73 = vector.broadcast %72 : vector<1x8xf32> to vector<16x8xf32>
    %74 = arith.addf %70, %73 : vector<16x8xf32>
    %75 = arith.truncf %64 : vector<16x8xf32> to vector<16x8xbf16>
    %76 = arith.truncf %69 : vector<16x8xf32> to vector<16x8xbf16>
    %cst_70 = arith.constant dense<0.000000e+00> : vector<16x16xf32>
    %77 = tpu.matmul %75, %76, %cst_70 {dimension_numbers = #tpu.dot_dimension_numbers<[1], [1], [0], [0], [0, 0, 1, 0], [], []>} : vector<16x8xbf16>, vector<16x8xbf16>, vector<16x16xf32> -> vector<16x16xf32>
    %78 = arith.addf %77, %7 : vector<16x16xf32>
    %cst_71 = arith.constant dense<0xFF800000> : vector<16xf32>
    %79 = vector.multi_reduction <maximumf>, %78, %cst_71 [1] : vector<16x16xf32> to vector<16xf32>
    %80 = vector.shape_cast %79 : vector<16xf32> to vector<16x1xf32>
    %81 = vector.broadcast %80 : vector<16x1xf32> to vector<16x16xf32>
    %82 = arith.subf %78, %81 : vector<16x16xf32>
    %83 = math.exp %82 : vector<16x16xf32>
    %cst_72 = arith.constant dense<0.000000e+00> : vector<16xf32>
    %84 = vector.multi_reduction <add>, %83, %cst_72 [1] : vector<16x16xf32> to vector<16xf32>
    %85 = vector.shape_cast %84 : vector<16xf32> to vector<16x1xf32>
    %86 = tpu.reciprocal %85 {approx = true} : vector<16x1xf32> -> vector<16x1xf32>
    %87 = vector.broadcast %86 : vector<16x1xf32> to vector<16x16xf32>
    %88 = arith.mulf %83, %87 : vector<16x16xf32>
    %89 = arith.truncf %88 : vector<16x16xf32> to vector<16x16xbf16>
    %90 = arith.truncf %74 : vector<16x8xf32> to vector<16x8xbf16>
    %cst_73 = arith.constant dense<0.000000e+00> : vector<16x8xf32>
    %91 = tpu.matmul %89, %90, %cst_73 {dimension_numbers = #tpu.dot_dimension_numbers<[1], [0], [0], [1], [0, 0, 1, 1], [], []>} : vector<16x16xbf16>, vector<16x8xbf16>, vector<16x8xf32> -> vector<16x8xf32>
    %92 = arith.truncf %91 : vector<16x8xf32> to vector<16x8xbf16>
    %c0_74 = arith.constant 0 : index
    %c1_75 = arith.constant 1 : index
    %c0_76 = arith.constant 0 : index
    %c0_77 = arith.constant 0 : index
    %93 = vector.load %arg17[%c0_74, %c1_75, %c0_76, %c0_77] : memref<1x4x8x32xbf16, #tpu.memory_space<vmem>>, vector<1x1x8x32xbf16>
    %94 = vector.shape_cast %93 : vector<1x1x8x32xbf16> to vector<8x32xbf16>
    %cst_78 = arith.constant dense<0.000000e+00> : vector<16x32xf32>
    %95 = tpu.matmul %92, %94, %cst_78 {dimension_numbers = #tpu.dot_dimension_numbers<[1], [0], [0], [1], [0, 0, 1, 1], [], []>} : vector<16x8xbf16>, vector<8x32xbf16>, vector<16x32xf32> -> vector<16x32xf32>
    %96 = arith.addf %53, %95 : vector<16x32xf32>
    %c0_79 = arith.constant 0 : index
    %c2 = arith.constant 2 : index
    %c0_80 = arith.constant 0 : index
    %c0_81 = arith.constant 0 : index
    %97 = vector.load %arg11[%c0_79, %c2, %c0_80, %c0_81] : memref<1x4x32x8xbf16, #tpu.memory_space<vmem>>, vector<1x1x32x8xbf16>
    %98 = vector.shape_cast %97 : vector<1x1x32x8xbf16> to vector<32x8xbf16>
    %c0_82 = arith.constant 0 : index
    %c2_83 = arith.constant 2 : index
    %c0_84 = arith.constant 0 : index
    %c0_85 = arith.constant 0 : index
    %99 = vector.load %arg12[%c0_82, %c2_83, %c0_84, %c0_85] : memref<1x4x32x8xbf16, #tpu.memory_space<vmem>>, vector<1x1x32x8xbf16>
    %100 = vector.shape_cast %99 : vector<1x1x32x8xbf16> to vector<32x8xbf16>
    %c0_86 = arith.constant 0 : index
    %c2_87 = arith.constant 2 : index
    %c0_88 = arith.constant 0 : index
    %c0_89 = arith.constant 0 : index
    %101 = vector.load %arg13[%c0_86, %c2_87, %c0_88, %c0_89] : memref<1x4x32x8xbf16, #tpu.memory_space<vmem>>, vector<1x1x32x8xbf16>
    %102 = vector.shape_cast %101 : vector<1x1x32x8xbf16> to vector<32x8xbf16>
    %cst_90 = arith.constant dense<0.000000e+00> : vector<16x8xf32>
    %103 = tpu.matmul %5, %98, %cst_90 {dimension_numbers = #tpu.dot_dimension_numbers<[1], [0], [0], [1], [0, 0, 1, 1], [], []>} : vector<16x32xbf16>, vector<32x8xbf16>, vector<16x8xf32> -> vector<16x8xf32>
    %c0_91 = arith.constant 0 : index
    %c2_92 = arith.constant 2 : index
    %c0_93 = arith.constant 0 : index
    %c0_94 = arith.constant 0 : index
    %104 = vector.load %arg14[%c0_91, %c2_92, %c0_93, %c0_94] : memref<1x4x1x8xf32, #tpu.memory_space<vmem>>, vector<1x1x1x8xf32>
    %105 = vector.shape_cast %104 : vector<1x1x1x8xf32> to vector<1x8xf32>
    %106 = vector.broadcast %105 : vector<1x8xf32> to vector<16x8xf32>
    %107 = arith.addf %103, %106 : vector<16x8xf32>
    %cst_95 = arith.constant dense<0.000000e+00> : vector<16x8xf32>
    %108 = tpu.matmul %5, %100, %cst_95 {dimension_numbers = #tpu.dot_dimension_numbers<[1], [0], [0], [1], [0, 0, 1, 1], [], []>} : vector<16x32xbf16>, vector<32x8xbf16>, vector<16x8xf32> -> vector<16x8xf32>
    %c0_96 = arith.constant 0 : index
    %c2_97 = arith.constant 2 : index
    %c0_98 = arith.constant 0 : index
    %c0_99 = arith.constant 0 : index
    %109 = vector.load %arg15[%c0_96, %c2_97, %c0_98, %c0_99] : memref<1x4x1x8xf32, #tpu.memory_space<vmem>>, vector<1x1x1x8xf32>
    %110 = vector.shape_cast %109 : vector<1x1x1x8xf32> to vector<1x8xf32>
    %111 = vector.broadcast %110 : vector<1x8xf32> to vector<16x8xf32>
    %112 = arith.addf %108, %111 : vector<16x8xf32>
    %cst_100 = arith.constant dense<0.000000e+00> : vector<16x8xf32>
    %113 = tpu.matmul %5, %102, %cst_100 {dimension_numbers = #tpu.dot_dimension_numbers<[1], [0], [0], [1], [0, 0, 1, 1], [], []>} : vector<16x32xbf16>, vector<32x8xbf16>, vector<16x8xf32> -> vector<16x8xf32>
    %c0_101 = arith.constant 0 : index
    %c2_102 = arith.constant 2 : index
    %c0_103 = arith.constant 0 : index
    %c0_104 = arith.constant 0 : index
    %114 = vector.load %arg16[%c0_101, %c2_102, %c0_103, %c0_104] : memref<1x4x1x8xf32, #tpu.memory_space<vmem>>, vector<1x1x1x8xf32>
    %115 = vector.shape_cast %114 : vector<1x1x1x8xf32> to vector<1x8xf32>
    %116 = vector.broadcast %115 : vector<1x8xf32> to vector<16x8xf32>
    %117 = arith.addf %113, %116 : vector<16x8xf32>
    %118 = arith.truncf %107 : vector<16x8xf32> to vector<16x8xbf16>
    %119 = arith.truncf %112 : vector<16x8xf32> to vector<16x8xbf16>
    %cst_105 = arith.constant dense<0.000000e+00> : vector<16x16xf32>
    %120 = tpu.matmul %118, %119, %cst_105 {dimension_numbers = #tpu.dot_dimension_numbers<[1], [1], [0], [0], [0, 0, 1, 0], [], []>} : vector<16x8xbf16>, vector<16x8xbf16>, vector<16x16xf32> -> vector<16x16xf32>
    %121 = arith.addf %120, %7 : vector<16x16xf32>
    %cst_106 = arith.constant dense<0xFF800000> : vector<16xf32>
    %122 = vector.multi_reduction <maximumf>, %121, %cst_106 [1] : vector<16x16xf32> to vector<16xf32>
    %123 = vector.shape_cast %122 : vector<16xf32> to vector<16x1xf32>
    %124 = vector.broadcast %123 : vector<16x1xf32> to vector<16x16xf32>
    %125 = arith.subf %121, %124 : vector<16x16xf32>
    %126 = math.exp %125 : vector<16x16xf32>
    %cst_107 = arith.constant dense<0.000000e+00> : vector<16xf32>
    %127 = vector.multi_reduction <add>, %126, %cst_107 [1] : vector<16x16xf32> to vector<16xf32>
    %128 = vector.shape_cast %127 : vector<16xf32> to vector<16x1xf32>
    %129 = tpu.reciprocal %128 {approx = true} : vector<16x1xf32> -> vector<16x1xf32>
    %130 = vector.broadcast %129 : vector<16x1xf32> to vector<16x16xf32>
    %131 = arith.mulf %126, %130 : vector<16x16xf32>
    %132 = arith.truncf %131 : vector<16x16xf32> to vector<16x16xbf16>
    %133 = arith.truncf %117 : vector<16x8xf32> to vector<16x8xbf16>
    %cst_108 = arith.constant dense<0.000000e+00> : vector<16x8xf32>
    %134 = tpu.matmul %132, %133, %cst_108 {dimension_numbers = #tpu.dot_dimension_numbers<[1], [0], [0], [1], [0, 0, 1, 1], [], []>} : vector<16x16xbf16>, vector<16x8xbf16>, vector<16x8xf32> -> vector<16x8xf32>
    %135 = arith.truncf %134 : vector<16x8xf32> to vector<16x8xbf16>
    %c0_109 = arith.constant 0 : index
    %c2_110 = arith.constant 2 : index
    %c0_111 = arith.constant 0 : index
    %c0_112 = arith.constant 0 : index
    %136 = vector.load %arg17[%c0_109, %c2_110, %c0_111, %c0_112] : memref<1x4x8x32xbf16, #tpu.memory_space<vmem>>, vector<1x1x8x32xbf16>
    %137 = vector.shape_cast %136 : vector<1x1x8x32xbf16> to vector<8x32xbf16>
    %cst_113 = arith.constant dense<0.000000e+00> : vector<16x32xf32>
    %138 = tpu.matmul %135, %137, %cst_113 {dimension_numbers = #tpu.dot_dimension_numbers<[1], [0], [0], [1], [0, 0, 1, 1], [], []>} : vector<16x8xbf16>, vector<8x32xbf16>, vector<16x32xf32> -> vector<16x32xf32>
    %139 = arith.addf %96, %138 : vector<16x32xf32>
    %c0_114 = arith.constant 0 : index
    %c3 = arith.constant 3 : index
    %c0_115 = arith.constant 0 : index
    %c0_116 = arith.constant 0 : index
    %140 = vector.load %arg11[%c0_114, %c3, %c0_115, %c0_116] : memref<1x4x32x8xbf16, #tpu.memory_space<vmem>>, vector<1x1x32x8xbf16>
    %141 = vector.shape_cast %140 : vector<1x1x32x8xbf16> to vector<32x8xbf16>
    %c0_117 = arith.constant 0 : index
    %c3_118 = arith.constant 3 : index
    %c0_119 = arith.constant 0 : index
    %c0_120 = arith.constant 0 : index
    %142 = vector.load %arg12[%c0_117, %c3_118, %c0_119, %c0_120] : memref<1x4x32x8xbf16, #tpu.memory_space<vmem>>, vector<1x1x32x8xbf16>
    %143 = vector.shape_cast %142 : vector<1x1x32x8xbf16> to vector<32x8xbf16>
    %c0_121 = arith.constant 0 : index
    %c3_122 = arith.constant 3 : index
    %c0_123 = arith.constant 0 : index
    %c0_124 = arith.constant 0 : index
    %144 = vector.load %arg13[%c0_121, %c3_122, %c0_123, %c0_124] : memref<1x4x32x8xbf16, #tpu.memory_space<vmem>>, vector<1x1x32x8xbf16>
    %145 = vector.shape_cast %144 : vector<1x1x32x8xbf16> to vector<32x8xbf16>
    %cst_125 = arith.constant dense<0.000000e+00> : vector<16x8xf32>
    %146 = tpu.matmul %5, %141, %cst_125 {dimension_numbers = #tpu.dot_dimension_numbers<[1], [0], [0], [1], [0, 0, 1, 1], [], []>} : vector<16x32xbf16>, vector<32x8xbf16>, vector<16x8xf32> -> vector<16x8xf32>
    %c0_126 = arith.constant 0 : index
    %c3_127 = arith.constant 3 : index
    %c0_128 = arith.constant 0 : index
    %c0_129 = arith.constant 0 : index
    %147 = vector.load %arg14[%c0_126, %c3_127, %c0_128, %c0_129] : memref<1x4x1x8xf32, #tpu.memory_space<vmem>>, vector<1x1x1x8xf32>
    %148 = vector.shape_cast %147 : vector<1x1x1x8xf32> to vector<1x8xf32>
    %149 = vector.broadcast %148 : vector<1x8xf32> to vector<16x8xf32>
    %150 = arith.addf %146, %149 : vector<16x8xf32>
    %cst_130 = arith.constant dense<0.000000e+00> : vector<16x8xf32>
    %151 = tpu.matmul %5, %143, %cst_130 {dimension_numbers = #tpu.dot_dimension_numbers<[1], [0], [0], [1], [0, 0, 1, 1], [], []>} : vector<16x32xbf16>, vector<32x8xbf16>, vector<16x8xf32> -> vector<16x8xf32>
    %c0_131 = arith.constant 0 : index
    %c3_132 = arith.constant 3 : index
    %c0_133 = arith.constant 0 : index
    %c0_134 = arith.constant 0 : index
    %152 = vector.load %arg15[%c0_131, %c3_132, %c0_133, %c0_134] : memref<1x4x1x8xf32, #tpu.memory_space<vmem>>, vector<1x1x1x8xf32>
    %153 = vector.shape_cast %152 : vector<1x1x1x8xf32> to vector<1x8xf32>
    %154 = vector.broadcast %153 : vector<1x8xf32> to vector<16x8xf32>
    %155 = arith.addf %151, %154 : vector<16x8xf32>
    %cst_135 = arith.constant dense<0.000000e+00> : vector<16x8xf32>
    %156 = tpu.matmul %5, %145, %cst_135 {dimension_numbers = #tpu.dot_dimension_numbers<[1], [0], [0], [1], [0, 0, 1, 1], [], []>} : vector<16x32xbf16>, vector<32x8xbf16>, vector<16x8xf32> -> vector<16x8xf32>
    %c0_136 = arith.constant 0 : index
    %c3_137 = arith.constant 3 : index
    %c0_138 = arith.constant 0 : index
    %c0_139 = arith.constant 0 : index
    %157 = vector.load %arg16[%c0_136, %c3_137, %c0_138, %c0_139] : memref<1x4x1x8xf32, #tpu.memory_space<vmem>>, vector<1x1x1x8xf32>
    %158 = vector.shape_cast %157 : vector<1x1x1x8xf32> to vector<1x8xf32>
    %159 = vector.broadcast %158 : vector<1x8xf32> to vector<16x8xf32>
    %160 = arith.addf %156, %159 : vector<16x8xf32>
    %161 = arith.truncf %150 : vector<16x8xf32> to vector<16x8xbf16>
    %162 = arith.truncf %155 : vector<16x8xf32> to vector<16x8xbf16>
    %cst_140 = arith.constant dense<0.000000e+00> : vector<16x16xf32>
    %163 = tpu.matmul %161, %162, %cst_140 {dimension_numbers = #tpu.dot_dimension_numbers<[1], [1], [0], [0], [0, 0, 1, 0], [], []>} : vector<16x8xbf16>, vector<16x8xbf16>, vector<16x16xf32> -> vector<16x16xf32>
    %164 = arith.addf %163, %7 : vector<16x16xf32>
    %cst_141 = arith.constant dense<0xFF800000> : vector<16xf32>
    %165 = vector.multi_reduction <maximumf>, %164, %cst_141 [1] : vector<16x16xf32> to vector<16xf32>
    %166 = vector.shape_cast %165 : vector<16xf32> to vector<16x1xf32>
    %167 = vector.broadcast %166 : vector<16x1xf32> to vector<16x16xf32>
    %168 = arith.subf %164, %167 : vector<16x16xf32>
    %169 = math.exp %168 : vector<16x16xf32>
    %cst_142 = arith.constant dense<0.000000e+00> : vector<16xf32>
    %170 = vector.multi_reduction <add>, %169, %cst_142 [1] : vector<16x16xf32> to vector<16xf32>
    %171 = vector.shape_cast %170 : vector<16xf32> to vector<16x1xf32>
    %172 = tpu.reciprocal %171 {approx = true} : vector<16x1xf32> -> vector<16x1xf32>
    %173 = vector.broadcast %172 : vector<16x1xf32> to vector<16x16xf32>
    %174 = arith.mulf %169, %173 : vector<16x16xf32>
    %175 = arith.truncf %174 : vector<16x16xf32> to vector<16x16xbf16>
    %176 = arith.truncf %160 : vector<16x8xf32> to vector<16x8xbf16>
    %cst_143 = arith.constant dense<0.000000e+00> : vector<16x8xf32>
    %177 = tpu.matmul %175, %176, %cst_143 {dimension_numbers = #tpu.dot_dimension_numbers<[1], [0], [0], [1], [0, 0, 1, 1], [], []>} : vector<16x16xbf16>, vector<16x8xbf16>, vector<16x8xf32> -> vector<16x8xf32>
    %178 = arith.truncf %177 : vector<16x8xf32> to vector<16x8xbf16>
    %c0_144 = arith.constant 0 : index
    %c3_145 = arith.constant 3 : index
    %c0_146 = arith.constant 0 : index
    %c0_147 = arith.constant 0 : index
    %179 = vector.load %arg17[%c0_144, %c3_145, %c0_146, %c0_147] : memref<1x4x8x32xbf16, #tpu.memory_space<vmem>>, vector<1x1x8x32xbf16>
    %180 = vector.shape_cast %179 : vector<1x1x8x32xbf16> to vector<8x32xbf16>
    %cst_148 = arith.constant dense<0.000000e+00> : vector<16x32xf32>
    %181 = tpu.matmul %178, %180, %cst_148 {dimension_numbers = #tpu.dot_dimension_numbers<[1], [0], [0], [1], [0, 0, 1, 1], [], []>} : vector<16x8xbf16>, vector<8x32xbf16>, vector<16x32xf32> -> vector<16x32xf32>
    %182 = arith.addf %139, %181 : vector<16x32xf32>
    %183 = arith.addf %182, %4 : vector<16x32xf32>
    %c0_149 = arith.constant 0 : index
    %c0_150 = arith.constant 0 : index
    %c0_151 = arith.constant 0 : index
    %184 = vector.load %arg19[%c0_149, %c0_150, %c0_151] : memref<1x1x32xf32, #tpu.memory_space<vmem>>, vector<1x1x32xf32>
    %185 = vector.shape_cast %184 : vector<1x1x32xf32> to vector<1x32xf32>
    %c0_152 = arith.constant 0 : index
    %c0_153 = arith.constant 0 : index
    %c0_154 = arith.constant 0 : index
    %186 = vector.load %arg20[%c0_152, %c0_153, %c0_154] : memref<1x1x32xf32, #tpu.memory_space<vmem>>, vector<1x1x32xf32>
    %187 = vector.shape_cast %186 : vector<1x1x32xf32> to vector<1x32xf32>
    %cst_155 = arith.constant dense<0.000000e+00> : vector<16xf32>
    %188 = vector.multi_reduction <add>, %183, %cst_155 [1] : vector<16x32xf32> to vector<16xf32>
    %189 = vector.shape_cast %188 : vector<16xf32> to vector<16x1xf32>
    %cst_156 = arith.constant 3.200000e+01 : f32
    %190 = vector.broadcast %cst_156 : f32 to vector<16x1xf32>
    %191 = arith.divf %189, %190 : vector<16x1xf32>
    %192 = vector.broadcast %191 : vector<16x1xf32> to vector<16x32xf32>
    %193 = arith.subf %183, %192 : vector<16x32xf32>
    %194 = arith.mulf %193, %193 : vector<16x32xf32>
    %cst_157 = arith.constant dense<0.000000e+00> : vector<16xf32>
    %195 = vector.multi_reduction <add>, %194, %cst_157 [1] : vector<16x32xf32> to vector<16xf32>
    %196 = vector.shape_cast %195 : vector<16xf32> to vector<16x1xf32>
    %cst_158 = arith.constant 3.200000e+01 : f32
    %197 = vector.broadcast %cst_158 : f32 to vector<16x1xf32>
    %198 = arith.divf %196, %197 : vector<16x1xf32>
    %199 = vector.broadcast %191 : vector<16x1xf32> to vector<16x32xf32>
    %200 = arith.subf %183, %199 : vector<16x32xf32>
    %cst_159 = arith.constant 9.99999996E-13 : f32
    %201 = vector.broadcast %cst_159 : f32 to vector<16x1xf32>
    %202 = arith.addf %198, %201 : vector<16x1xf32>
    %203 = math.rsqrt %202 : vector<16x1xf32>
    %204 = vector.broadcast %203 : vector<16x1xf32> to vector<16x32xf32>
    %205 = arith.mulf %200, %204 : vector<16x32xf32>
    %206 = vector.broadcast %185 : vector<1x32xf32> to vector<16x32xf32>
    %207 = arith.mulf %205, %206 : vector<16x32xf32>
    %208 = vector.broadcast %187 : vector<1x32xf32> to vector<16x32xf32>
    %209 = arith.addf %207, %208 : vector<16x32xf32>
    %210 = arith.truncf %209 : vector<16x32xf32> to vector<16x32xbf16>
    %c0_160 = arith.constant 0 : index
    %c0_161 = arith.constant 0 : index
    %c0_162 = arith.constant 0 : index
    %211 = vector.load %arg21[%c0_160, %c0_161, %c0_162] : memref<1x32x64xbf16, #tpu.memory_space<vmem>>, vector<1x32x64xbf16>
    %212 = vector.shape_cast %211 : vector<1x32x64xbf16> to vector<32x64xbf16>
    %cst_163 = arith.constant dense<0.000000e+00> : vector<16x64xf32>
    %213 = tpu.matmul %210, %212, %cst_163 {dimension_numbers = #tpu.dot_dimension_numbers<[1], [0], [0], [1], [0, 0, 1, 1], [], []>} : vector<16x32xbf16>, vector<32x64xbf16>, vector<16x64xf32> -> vector<16x64xf32>
    %c0_164 = arith.constant 0 : index
    %c0_165 = arith.constant 0 : index
    %c0_166 = arith.constant 0 : index
    %214 = vector.load %arg22[%c0_164, %c0_165, %c0_166] : memref<1x1x64xf32, #tpu.memory_space<vmem>>, vector<1x1x64xf32>
    %215 = vector.shape_cast %214 : vector<1x1x64xf32> to vector<1x64xf32>
    %216 = vector.broadcast %215 : vector<1x64xf32> to vector<16x64xf32>
    %217 = arith.addf %213, %216 : vector<16x64xf32>
    %218 = arith.mulf %217, %217 : vector<16x64xf32>
    %219 = arith.mulf %217, %218 : vector<16x64xf32>
    %cst_167 = arith.constant 4.471500e-02 : f32
    %220 = vector.broadcast %cst_167 : f32 to vector<16x64xf32>
    %221 = arith.mulf %220, %219 : vector<16x64xf32>
    %222 = arith.addf %217, %221 : vector<16x64xf32>
    %cst_168 = arith.constant 0.797884583 : f32
    %223 = vector.broadcast %cst_168 : f32 to vector<16x64xf32>
    %224 = arith.mulf %223, %222 : vector<16x64xf32>
    %225 = math.tanh %224 : vector<16x64xf32>
    %cst_169 = arith.constant 1.000000e+00 : f32
    %226 = vector.broadcast %cst_169 : f32 to vector<16x64xf32>
    %227 = arith.addf %226, %225 : vector<16x64xf32>
    %cst_170 = arith.constant 5.000000e-01 : f32
    %228 = vector.broadcast %cst_170 : f32 to vector<16x64xf32>
    %229 = arith.mulf %228, %227 : vector<16x64xf32>
    %230 = arith.mulf %217, %229 : vector<16x64xf32>
    %231 = arith.truncf %230 : vector<16x64xf32> to vector<16x64xbf16>
    %c0_171 = arith.constant 0 : index
    %c0_172 = arith.constant 0 : index
    %c0_173 = arith.constant 0 : index
    %232 = vector.load %arg23[%c0_171, %c0_172, %c0_173] : memref<1x64x32xbf16, #tpu.memory_space<vmem>>, vector<1x64x32xbf16>
    %233 = vector.shape_cast %232 : vector<1x64x32xbf16> to vector<64x32xbf16>
    %cst_174 = arith.constant dense<0.000000e+00> : vector<16x32xf32>
    %234 = tpu.matmul %231, %233, %cst_174 {dimension_numbers = #tpu.dot_dimension_numbers<[1], [0], [0], [1], [0, 0, 1, 1], [], []>} : vector<16x64xbf16>, vector<64x32xbf16>, vector<16x32xf32> -> vector<16x32xf32>
    %c0_175 = arith.constant 0 : index
    %c0_176 = arith.constant 0 : index
    %c0_177 = arith.constant 0 : index
    %235 = vector.load %arg24[%c0_175, %c0_176, %c0_177] : memref<1x1x32xf32, #tpu.memory_space<vmem>>, vector<1x1x32xf32>
    %236 = vector.shape_cast %235 : vector<1x1x32xf32> to vector<1x32xf32>
    %237 = vector.broadcast %236 : vector<1x32xf32> to vector<16x32xf32>
    %238 = arith.addf %234, %237 : vector<16x32xf32>
    %239 = arith.addf %238, %209 : vector<16x32xf32>
    %c0_178 = arith.constant 0 : index
    %c0_179 = arith.constant 0 : index
    %c0_180 = arith.constant 0 : index
    %240 = vector.load %arg25[%c0_178, %c0_179, %c0_180] : memref<1x1x32xf32, #tpu.memory_space<vmem>>, vector<1x1x32xf32>
    %241 = vector.shape_cast %240 : vector<1x1x32xf32> to vector<1x32xf32>
    %c0_181 = arith.constant 0 : index
    %c0_182 = arith.constant 0 : index
    %c0_183 = arith.constant 0 : index
    %242 = vector.load %arg26[%c0_181, %c0_182, %c0_183] : memref<1x1x32xf32, #tpu.memory_space<vmem>>, vector<1x1x32xf32>
    %243 = vector.shape_cast %242 : vector<1x1x32xf32> to vector<1x32xf32>
    %cst_184 = arith.constant dense<0.000000e+00> : vector<16xf32>
    %244 = vector.multi_reduction <add>, %239, %cst_184 [1] : vector<16x32xf32> to vector<16xf32>
    %245 = vector.shape_cast %244 : vector<16xf32> to vector<16x1xf32>
    %cst_185 = arith.constant 3.200000e+01 : f32
    %246 = vector.broadcast %cst_185 : f32 to vector<16x1xf32>
    %247 = arith.divf %245, %246 : vector<16x1xf32>
    %248 = vector.broadcast %247 : vector<16x1xf32> to vector<16x32xf32>
    %249 = arith.subf %239, %248 : vector<16x32xf32>
    %250 = arith.mulf %249, %249 : vector<16x32xf32>
    %cst_186 = arith.constant dense<0.000000e+00> : vector<16xf32>
    %251 = vector.multi_reduction <add>, %250, %cst_186 [1] : vector<16x32xf32> to vector<16xf32>
    %252 = vector.shape_cast %251 : vector<16xf32> to vector<16x1xf32>
    %cst_187 = arith.constant 3.200000e+01 : f32
    %253 = vector.broadcast %cst_187 : f32 to vector<16x1xf32>
    %254 = arith.divf %252, %253 : vector<16x1xf32>
    %255 = vector.broadcast %247 : vector<16x1xf32> to vector<16x32xf32>
    %256 = arith.subf %239, %255 : vector<16x32xf32>
    %cst_188 = arith.constant 9.99999996E-13 : f32
    %257 = vector.broadcast %cst_188 : f32 to vector<16x1xf32>
    %258 = arith.addf %254, %257 : vector<16x1xf32>
    %259 = math.rsqrt %258 : vector<16x1xf32>
    %260 = vector.broadcast %259 : vector<16x1xf32> to vector<16x32xf32>
    %261 = arith.mulf %256, %260 : vector<16x32xf32>
    %262 = vector.broadcast %241 : vector<1x32xf32> to vector<16x32xf32>
    %263 = arith.mulf %261, %262 : vector<16x32xf32>
    %264 = vector.broadcast %243 : vector<1x32xf32> to vector<16x32xf32>
    %265 = arith.addf %263, %264 : vector<16x32xf32>
    %c0_189 = arith.constant 0 : index
    %c0_190 = arith.constant 0 : index
    %c0_191 = arith.constant 0 : index
    %266 = vector.load %arg27[%c0_189, %c0_190, %c0_191] : memref<1x16x32xf32, #tpu.memory_space<vmem>>, vector<1x16x32xf32>
    %267 = vector.shape_cast %266 : vector<1x16x32xf32> to vector<16x32xf32>
    %268 = vector.shape_cast %265 : vector<16x32xf32> to vector<1x16x32xf32>
    tpu.vector_store %arg27[%c0_189, %c0_190, %c0_191], %268 {strides = array<i32>} : memref<1x16x32xf32, #tpu.memory_space<vmem>>, vector<1x16x32xf32>,
    return
  }
  func.func @transform_0(%arg0: i32, %arg1: i32) -> (i32, i32, i32) {
    %c0_i32 = arith.constant 0 : i32
    %c0_i32_0 = arith.constant 0 : i32
    %c0_i32_1 = arith.constant 0 : i32
    return %arg0, %c0_i32, %c0_i32_0 : i32, i32, i32
  }
  func.func @transform_1(%arg0: i32, %arg1: i32) -> (i32, i32, i32) {
    %c0_i32 = arith.constant 0 : i32
    %c0_i32_0 = arith.constant 0 : i32
    %c0_i32_1 = arith.constant 0 : i32
    return %arg0, %c0_i32, %c0_i32_0 : i32, i32, i32
  }
  func.func @transform_2(%arg0: i32, %arg1: i32) -> (i32, i32, i32) {
    %c0_i32 = arith.constant 0 : i32
    %c0_i32_0 = arith.constant 0 : i32
    %c0_i32_1 = arith.constant 0 : i32
    return %arg0, %c0_i32, %c0_i32_0 : i32, i32, i32
  }
  func.func @transform_3(%arg0: i32, %arg1: i32) -> (i32, i32, i32) {
    %c0_i32 = arith.constant 0 : i32
    %c0_i32_0 = arith.constant 0 : i32
    %c0_i32_1 = arith.constant 0 : i32
    return %arg0, %c0_i32, %c0_i32_0 : i32, i32, i32
  }
  func.func @transform_4(%arg0: i32, %arg1: i32) -> (i32, i32, i32) {
    %c0_i32 = arith.constant 0 : i32
    %c0_i32_0 = arith.constant 0 : i32
    %c0_i32_1 = arith.constant 0 : i32
    return %arg0, %c0_i32, %c0_i32_0 : i32, i32, i32
  }
  func.func @transform_5(%arg0: i32, %arg1: i32) -> (i32, i32, i32) {
    %c0_i32 = arith.constant 0 : i32
    %c0_i32_0 = arith.constant 0 : i32
    %c0_i32_1 = arith.constant 0 : i32
    return %arg0, %c0_i32, %c0_i32_0 : i32, i32, i32
  }
  func.func @transform_6(%arg0: i32, %arg1: i32) -> (i32, i32) {
    %c0_i32 = arith.constant 0 : i32
    %c0_i32_0 = arith.constant 0 : i32
    %c0_i32_1 = arith.constant 0 : i32
    return %c0_i32, %c0_i32_0 : i32, i32
  }
  func.func @transform_7(%arg0: i32, %arg1: i32) -> (i32, i32) {
    %c0_i32 = arith.constant 0 : i32
    %c0_i32_0 = arith.constant 0 : i32
    %c0_i32_1 = arith.constant 0 : i32
    return %c0_i32, %c0_i32_0 : i32, i32
  }
  func.func @transform_8(%arg0: i32, %arg1: i32) -> (i32, i32) {
    %c0_i32 = arith.constant 0 : i32
    %c0_i32_0 = arith.constant 0 : i32
    %c0_i32_1 = arith.constant 0 : i32
    return %c0_i32, %c0_i32_0 : i32, i32
  }
  func.func @transform_9(%arg0: i32, %arg1: i32) -> (i32, i32, i32, i32) {
    %c0_i32 = arith.constant 0 : i32
    %c0_i32_0 = arith.constant 0 : i32
    %c0_i32_1 = arith.constant 0 : i32
    %c0_i32_2 = arith.constant 0 : i32
    return %arg1, %c0_i32, %c0_i32_0, %c0_i32_1 : i32, i32, i32, i32
  }
  func.func @transform_10(%arg0: i32, %arg1: i32) -> (i32, i32, i32, i32) {
    %c0_i32 = arith.constant 0 : i32
    %c0_i32_0 = arith.constant 0 : i32
    %c0_i32_1 = arith.constant 0 : i32
    %c0_i32_2 = arith.constant 0 : i32
    return %arg1, %c0_i32, %c0_i32_0, %c0_i32_1 : i32, i32, i32, i32
  }
  func.func @transform_11(%arg0: i32, %arg1: i32) -> (i32, i32, i32, i32) {
    %c0_i32 = arith.constant 0 : i32
    %c0_i32_0 = arith.constant 0 : i32
    %c0_i32_1 = arith.constant 0 : i32
    %c0_i32_2 = arith.constant 0 : i32
    return %arg1, %c0_i32, %c0_i32_0, %c0_i32_1 : i32, i32, i32, i32
  }
  func.func @transform_12(%arg0: i32, %arg1: i32) -> (i32, i32, i32, i32) {
    %c0_i32 = arith.constant 0 : i32
    %c0_i32_0 = arith.constant 0 : i32
    %c0_i32_1 = arith.constant 0 : i32
    %c0_i32_2 = arith.constant 0 : i32
    return %arg1, %c0_i32, %c0_i32_0, %c0_i32_1 : i32, i32, i32, i32
  }
  func.func @transform_13(%arg0: i32, %arg1: i32) -> (i32, i32, i32, i32) {
    %c0_i32 = arith.constant 0 : i32
    %c0_i32_0 = arith.constant 0 : i32
    %c0_i32_1 = arith.constant 0 : i32
    %c0_i32_2 = arith.constant 0 : i32
    return %arg1, %c0_i32, %c0_i32_0, %c0_i32_1 : i32, i32, i32, i32
  }
  func.func @transform_14(%arg0: i32, %arg1: i32) -> (i32, i32, i32, i32) {
    %c0_i32 = arith.constant 0 : i32
    %c0_i32_0 = arith.constant 0 : i32
    %c0_i32_1 = arith.constant 0 : i32
    %c0_i32_2 = arith.constant 0 : i32
    return %arg1, %c0_i32, %c0_i32_0, %c0_i32_1 : i32, i32, i32, i32
  }
  func.func @transform_15(%arg0: i32, %arg1: i32) -> (i32, i32, i32, i32) {
    %c0_i32 = arith.constant 0 : i32
    %c0_i32_0 = arith.constant 0 : i32
    %c0_i32_1 = arith.constant 0 : i32
    %c0_i32_2 = arith.constant 0 : i32
    return %arg1, %c0_i32, %c0_i32_0, %c0_i32_1 : i32, i32, i32, i32
  }
  func.func @transform_16(%arg0: i32, %arg1: i32) -> (i32, i32, i32) {
    %c0_i32 = arith.constant 0 : i32
    %c0_i32_0 = arith.constant 0 : i32
    %c0_i32_1 = arith.constant 0 : i32
    return %arg1, %c0_i32, %c0_i32_0 : i32, i32, i32
  }
  func.func @transform_17(%arg0: i32, %arg1: i32) -> (i32, i32, i32) {
    %c0_i32 = arith.constant 0 : i32
    %c0_i32_0 = arith.constant 0 : i32
    %c0_i32_1 = arith.constant 0 : i32
    return %arg1, %c0_i32, %c0_i32_0 : i32, i32, i32
  }
  func.func @transform_18(%arg0: i32, %arg1: i32) -> (i32, i32, i32) {
    %c0_i32 = arith.constant 0 : i32
    %c0_i32_0 = arith.constant 0 : i32
    %c0_i32_1 = arith.constant 0 : i32
    return %arg1, %c0_i32, %c0_i32_0 : i32, i32, i32
  }
  func.func @transform_19(%arg0: i32, %arg1: i32) -> (i32, i32, i32) {
    %c0_i32 = arith.constant 0 : i32
    %c0_i32_0 = arith.constant 0 : i32
    %c0_i32_1 = arith.constant 0 : i32
    return %arg1, %c0_i32, %c0_i32_0 : i32, i32, i32
  }
  func.func @transform_20(%arg0: i32, %arg1: i32) -> (i32, i32, i32) {
    %c0_i32 = arith.constant 0 : i32
    %c0_i32_0 = arith.constant 0 : i32
    %c0_i32_1 = arith.constant 0 : i32
    return %arg1, %c0_i32, %c0_i32_0 : i32, i32, i32
  }
  func.func @transform_21(%arg0: i32, %arg1: i32) -> (i32, i32, i32) {
    %c0_i32 = arith.constant 0 : i32
    %c0_i32_0 = arith.constant 0 : i32
    %c0_i32_1 = arith.constant 0 : i32
    return %arg1, %c0_i32, %c0_i32_0 : i32, i32, i32
  }
  func.func @transform_22(%arg0: i32, %arg1: i32) -> (i32, i32, i32) {
    %c0_i32 = arith.constant 0 : i32
    %c0_i32_0 = arith.constant 0 : i32
    %c0_i32_1 = arith.constant 0 : i32
    return %arg1, %c0_i32, %c0_i32_0 : i32, i32, i32
  }
  func.func @transform_23(%arg0: i32, %arg1: i32) -> (i32, i32, i32) {
    %c0_i32 = arith.constant 0 : i32
    %c0_i32_0 = arith.constant 0 : i32
    %c0_i32_1 = arith.constant 0 : i32
    return %arg1, %c0_i32, %c0_i32_0 : i32, i32, i32
  }
  func.func @transform_24(%arg0: i32, %arg1: i32) -> (i32, i32, i32) {
    %c0_i32 = arith.constant 0 : i32
    %c0_i32_0 = arith.constant 0 : i32
    %c0_i32_1 = arith.constant 0 : i32
    return %arg1, %c0_i32, %c0_i32_0 : i32, i32, i32
  }
  func.func @transform_25(%arg0: i32, %arg1: i32) -> (i32, i32, i32) {
    %c0_i32 = arith.constant 0 : i32
    %c0_i32_0 = arith.constant 0 : i32
    %c0_i32_1 = arith.constant 0 : i32
    return %arg0, %c0_i32, %c0_i32_0 : i32, i32, i32
  }
}

</mosaic_0001>

<bundles_post_ra>
// kernel: tpu_custom_call.1
= control target key start
LH: loop header
LB: loop body
LE: loop exit
PB: predicated region body
PF: predicated region fallthrough
CT: control target
= control target key end

     0   :  { %s4773_s0 = inlined_call_operand.vmem [shape: f32[2,16,16], index: 0, kind: input, shape index: {}]   ;;  %s4774_s1 = inlined_call_operand.vmem [shape: f32[2,16,16], index: 1, kind: input, shape index: {}]   ;;  %s4775_s2 = inlined_call_operand.vmem [shape: f32[2,1,16], index: 2, kind: input, shape index: {}]   ;;  %s4776_s3 = inlined_call_operand.vmem [shape: f32[2,16,1], index: 3, kind: input, shape index: {}]   ;;  %s4777_s4 = inlined_call_operand.vmem [shape: f32[2,16,32], index: 4, kind: input, shape index: {}]   ;;  %s4778_s5 = inlined_call_operand.vmem [shape: f32[2,16,32], index: 5, kind: input, shape index: {}]   ;;  %s4779_s6 = inlined_call_operand.vmem [shape: f32[1,32], index: 6, kind: input, shape index: {}]   ;;  %s4780_s7 = inlined_call_operand.vmem [shape: f32[1,32], index: 7, kind: input, shape index: {}]   ;;  %s4781_s8 = inlined_call_operand.vmem [shape: f32[1,32], index: 8, kind: input, shape index: {}]   ;;  %s4782_s9 = inlined_call_operand.vmem [shape: bf16[2,4,32,8], index: 9, kind: input, shape index: {}]   ;;  %s4783_s10 = inlined_call_operand.vmem [shape: bf16[2,4,32,8], index: 10, kind: input, shape index: {}]   ;;  %s4784_s11 = inlined_call_operand.vmem [shape: bf16[2,4,32,8], index: 11, kind: input, shape index: {}]   ;;  %s4785_s12 = inlined_call_operand.vmem [shape: f32[2,4,1,8], index: 12, kind: input, shape index: {}]   ;;  %s4786_s13 = inlined_call_operand.vmem [shape: f32[2,4,1,8], index: 13, kind: input, shape index: {}]   ;;  %s4787_s14 = inlined_call_operand.vmem [shape: f32[2,4,1,8], index: 14, kind: input, shape index: {}]   ;;  %s4788_s15 = inlined_call_operand.vmem [shape: bf16[2,4,8,32], index: 15, kind: input, shape index: {}]   ;;  %s4789_s16 = inlined_call_operand.vmem [shape: f32[2,1,32], index: 16, kind: input, shape index: {}]   ;;  %s4790_s17 = inlined_call_operand.vmem [shape: f32[2,1,32], index: 17, kind: input, shape index: {}]   ;;  %s4791_s18 = inlined_call_operand.vmem [shape: f32[2,1,32], index: 18, kind: input, shape index: {}]   ;;  %s4792_s19 = inlined_call_operand.vmem [shape: bf16[2,32,64], index: 19, kind: input, shape index: {}]   ;;  %s4793_s20 = inlined_call_operand.vmem [shape: f32[2,1,64], index: 20, kind: input, shape index: {}]   ;;  %s4794_s21 = inlined_call_operand.vmem [shape: bf16[2,64,32], index: 21, kind: input, shape index: {}]   ;;  %s4795_s22 = inlined_call_operand.vmem [shape: f32[2,1,32], index: 22, kind: input, shape index: {}]   ;;  %s4796_s23 = inlined_call_operand.vmem [shape: f32[2,1,32], index: 23, kind: input, shape index: {}]   ;;  %s4797_s24 = inlined_call_operand.vmem [shape: f32[2,1,32], index: 24, kind: input, shape index: {}]   ;;  %s4798_s25 = inlined_call_operand.hbm [shape: f32[2,16,32], index: 25, kind: output, shape index: {}]  }
   0x1   :  { %4820 = sst [smem:[#allocation24_spill]] %s4773_s0 }
   0x2   :  { %4821 = sst [smem:[#allocation25_spill]] %s4774_s1 }
   0x3   :  { %4822 = sst [smem:[#allocation26_spill]] %s4775_s2 }
   0x4   :  { %4823 = sst [smem:[#allocation27_spill]] %s4776_s3 }
   0x5   :  { %4824 = sst [smem:[#allocation28_spill]] %s4777_s4 }
   0x6   :  { %4825 = sst [smem:[#allocation29_spill]] %s4778_s5 }
   0x7   :  { %4826 = sst [smem:[#allocation30_spill]] %s4779_s6 }
   0x8   :  { %4827 = sst [smem:[#allocation31_spill]] %s4780_s7 }
   0x9   :  { %4828 = sst [smem:[#allocation32_spill]] %s4781_s8 }
   0xa   :  { %4829 = sst [smem:[#allocation33_spill]] %s4782_s9 }
   0xb   :  { %4830 = sst [smem:[#allocation34_spill]] %s4783_s10 }
   0xc   :  { %4831 = sst [smem:[#allocation35_spill]] %s4784_s11 }
   0xd   :  { %4832 = sst [smem:[#allocation36_spill]] %s4785_s12 }
   0xe   :  { %4833 = sst [smem:[#allocation37_spill]] %s4786_s13 }
   0xf   :  { %4834 = sst [smem:[#allocation38_spill]] %s4787_s14 }
  0x10   :  { %4835 = sst [smem:[#allocation39_spill]] %s4788_s15 }
  0x11   :  { %4836 = sst [smem:[#allocation40_spill]] %s4789_s16 }
  0x12   :  { %4837 = sst [smem:[#allocation41_spill]] %s4790_s17 }
  0x13   :  { %4838 = sst [smem:[#allocation42_spill]] %s4791_s18 }
  0x14   :  { %4839 = sst [smem:[#allocation43_spill]] %s4792_s19 }
  0x15   :  { %4840 = sst [smem:[#allocation44_spill]] %s4794_s21 }
  0x16   :  { %4841 = sst [smem:[#allocation45_spill]] %s4795_s22 }
  0x17   :  { %4842 = sst [smem:[#allocation46_spill]] %s4796_s23 }
  0x18   :  { %4843 = sst [smem:[#allocation47_spill]] %s4797_s24 }
  0x19   :  { %4844 = sst [smem:[#allocation48_spill]] %s4798_s25 }
  0x1a   :  { %30 = vsyncpa [#allocation3], 0 }
  0x1b   :  { %32 = vsyncpa [#allocation3 + $0x1], 0  ;;  %s4192_s29 = smov 0   ;;  %s4194_s2 = smov 0  }
  0x1c   :  { %s4196_s6 = smov 0   ;;  %s4198_s30 = smov 0  }
  0x1d   :  { %s4200_s7 = smov 0   ;;  %s4202_s3 = smov 0  }
  0x1e   :  { %s4204_s26 = smov 0   ;;  %s4206_s1 = smov 0  }
  0x1f LB: > { %4845 = sst [smem:[#allocation5_spill]] %s4024_s29  ;;  %s3355_s8 = sadd.s32 4294967295, %s4052_s1   ;;  %s4052_s1 = sphi %s4206_s1, %s38_s1   ;;  %s4048_s26 = sphi %s4204_s26, %s4923_s26   ;;  %s4044_s3 = sphi %s4202_s3, %s4922_s3   ;;  %s4040_s7 = sphi %s4200_s7, %s4921_s7   ;;  %s4036_s30 = sphi %s4198_s30, %s4920_s30   ;;  %s4032_s6 = sphi %s4196_s6, %s4919_s6   ;;  %s4028_s2 = sphi %s4194_s2, %s4918_s2   ;;  %s4024_s29 = sphi %s4192_s29, %s4917_s29  }
  0x20   : > { %4846 = sst [smem:[#allocation6_spill]] %s4028_s2  ;;  %s3356_s27 = sadd.s32 4294967294, %s4052_s1  }
  0x21   : > { %4847 = sst [smem:[#allocation7_spill]] %s4032_s6  ;;  %s47_s4 = sadd.s32 1, %s4044_s3 }
  0x22   : > { %4848 = sst [smem:[#allocation8_spill]] %s4036_s30  ;;  %p48_p0 = scmp.ge.s32.totalorder %s47_s4, 2 }
  0x23   : > { %4849 = sst [smem:[#allocation9_spill]] %s4040_s7  ;;  %s50_s28 = sadd.s32 1, %s4048_s26 }
  0x24   : > { %4850 = sst [smem:[#allocation10_spill]] %s4044_s3  ;;  %p702_p1 = scmp.ne.s32.totalorder %s4032_s6, %s4028_s2 }
  0x25   : > { %4851 = sst [smem:[#allocation11_spill]] %s4048_s26  ;;  %p703_p2 = scmp.eq.s32.totalorder %s3355_s8, 3 }
  0x26   : > { %4852 = sst [smem:[#allocation12_spill]] %s4052_s1  ;;  %s4925_s4 = smov (%p48_p0, %s47_s4), 0 }
  0x27   : > { %4853 = sst [smem:[#allocation13_spill]] %s4925_s4  ;;  %s4927_s28 = smov (!%p48_p0, %s50_s28), %s4048_s26 }
  0x28   : > { %p4241_p3 = por %p703_p2, %p702_p1  ;;  %p708_p4 = scmp.ne.s32.totalorder %s4028_s2, %s4024_s29 }
  0x29   : > { %p52_p5 = scmp.ge.s32.totalorder %s4927_s28, 2  ;;  %p709_p6 = scmp.eq.s32.totalorder %s3356_s27, 3 }
  0x2a   : > { %s4854_s9 = scalar_select %p4241_p3, 1, 0 }
  0x2b   : > { %p3359_p7 = scmp.ge.s32.totalorder %s4052_s1, 1  ;;  %p893_p8 = scmp.lt.s32.totalorder %s4052_s1, 5 }
  0x2c   : > { %4855 = sst [smem:[#allocation14_spill]] %s4854_s9  ;;  %s4929_s28 = smov (%p52_p5, %s4927_s28), 0 }
  0x2d   : > { %4856 = sst [smem:[#allocation15_spill]] %s4929_s28  ;;  %p4251_p9 = por %p709_p6, %p708_p4 }
  0x2e   : > { %p894_p10 = pnand %p3359_p7, %p893_p8  ;;  %s689_s0 = ssub.s32 %s4048_s26, %s4929_s28 }
  0x2f   : > { %s4857_s5 = scalar_select %p4251_p9, 1, 0 }
  0x30   : > { %s692_s8 = sadd.s32 1, %s4032_s6  ;;  %p690_p11 = scmp.eq.s32.totalorder %s689_s0, 0 }
  0x31   : > { %4858 = sst [smem:[#allocation16_spill]] %s4857_s5  ;;  %897 = sbr.rel (%p894_p10) target bundleno = 6058 (0x17aa), region = 120 }
  0x32   : > { %s4259_s4 = scalar_select %p690_p11, %s4032_s6, %s692_s8  }
  0x34   : > { %4859 = sst [smem:[#allocation17_spill]] %s4259_s4 }
  0x38   : > { %s4808_s27 = sand.u32 1, %s4028_s2   ;;  %p1047_p12 = scmp.lt.s32.totalorder %s4040_s7, 1 }
  0x39   : > { %s4265_s3 = sshll.u32 %s4808_s27, 4  ;;  %p1075_p13 = scmp.lt.s32.totalorder %s4036_s30, 1 }
  0x3a   : > { %s4269_s5 = scalar_select %p1047_p12, %s4040_s7, 1 }
  0x3b   : > { %s4272_s0 = scalar_select %p1075_p13, %s4036_s30, 1 }
  0x3c   : > { %4860 = sst [smem:[#allocation18_spill]] %s4269_s5  ;;  %s3520_s8 = sshll.u32 %s4269_s5, 4 }
  0x3d   : > { %s4862_s25 = sld [smem:[#allocation24_spill]]  ;;  %s4863_s7 = sld [smem:[#allocation25_spill]] }
  0x3e   : > { %s4865_s21 = sld [smem:[#allocation27_spill]]  ;;  %s4866_s28 = sld [smem:[#allocation28_spill]] }
  0x3f   : > { %s4867_s1 = sld [smem:[#allocation29_spill]]  ;;  %s3525_s2 = sshll.u32 %s4272_s0, 6 }
  0x40   : > { %s4870_s10 = sld [smem:[#allocation34_spill]]  ;;  %s4871_s11 = sld [smem:[#allocation35_spill]] }
  0x41   : > { %s4873_s12 = sld [smem:[#allocation36_spill]]  ;;  %s4875_s13 = sld [smem:[#allocation37_spill]] }
  0x42   : > { %s4876_s14 = sld [smem:[#allocation38_spill]]  ;;  %s4877_s15 = sld [smem:[#allocation39_spill]] }
  0x43   : > { %s4282_s27 = scalar_lea.vmem %s4862_s25, %s3520_s8  ;;  %s4287_s30 = scalar_lea.vmem %s4863_s7, %s3520_s8 }
  0x44   : > { %4864 = sst [smem:[#allocation19_spill]] %s4287_s30  ;;  %s4292_s22 = scalar_lea.vmem %s4865_s21, %s3520_s8 }
  0x45   : > { %s4297_s6 = scalar_lea.vmem %s4866_s28, %s3520_s8  ;;  %s4302_s5 = scalar_lea.vmem %s4867_s1, %s3520_s8 }
  0x46   : > { %s4868_s30 = sld [smem:[#allocation33_spill]]  ;;  %s4313_s26 = scalar_lea.vmem %s4870_s10, %s3525_s2 }
  0x47   : > { %s4318_s29 = scalar_lea.vmem %s4871_s11, %s3525_s2  ;;  %s3377_s8 = sshll.u32 %s4272_s0, 2 }
  0x48   : > { %4872 = sst [smem:[#allocation21_spill]] %s4318_s29  ;;  %s4324_s7 = scalar_lea.vmem %s4873_s12, %s3377_s8 }
  0x49   : > { %4874 = sst [smem:[#allocation22_spill]] %s4324_s7  ;;  %s4329_s21 = scalar_lea.vmem %s4875_s13, %s3377_s8 }
  0x4a   : > { %s4334_s4 = scalar_lea.vmem %s4876_s14, %s3377_s8  ;;  %s4882_s19 = sld [smem:[#allocation43_spill]] }
  0x4b   : > { %s4883_s12 = sld [smem:[#allocation45_spill]]  ;;  %s4885_s10 = sld [smem:[#allocation46_spill]] }
  0x4c   : > { %s4308_s23 = scalar_lea.vmem %s4868_s30, %s3525_s2  ;;  %s3528_s2 = sshll.u32 %s4272_s0, 4 }
  0x4d   : > { %4869 = sst [smem:[#allocation20_spill]] %s4308_s23  ;;  %s4340_s29 = scalar_lea.vmem %s4877_s15, %s3528_s2 }
  0x4e   : > { %4878 = sst [smem:[#allocation23_spill]] %s4340_s29  ;;  %s1123_s15 = scalar_lea.vmem %s4793_s20, %s4272_s0 }
  0x4f   : > { %s3530_s29 = sshll.u32 %s4272_s0, 5  ;;  %s4884_s30 = sld [smem:[#allocation44_spill]] }
  0x50   : > { %s4357_s14 = scalar_lea.vmem %s4882_s19, %s3528_s2  ;;  %s4886_s19 = sld [smem:[#allocation47_spill]] }
  0x51   : > { %s1131_s16 = scalar_lea.vmem %s4883_s12, %s4272_s0  ;;  %s1134_s8 = scalar_lea.vmem %s4885_s10, %s4272_s0 }
  0x52   : > { %s4382_s11 = scalar_lea.vmem [#allocation2], %s4265_s3  ;;  %s4887_s28 = sld [smem:[#allocation8_spill]] }
  0x55   : > { %s4371_s17 = scalar_lea.vmem %s4884_s30, %s3530_s29 }
  0x56   : > { %s1137_s18 = scalar_lea.vmem %s4886_s19, %s4272_s0 }
  0x58   : > { %p3386_p0 = scmp.ne.s32.totalorder %s4887_s28, 0 }
  0x59   : > { %s4888_s12 = sld [smem:[#allocation18_spill]] (!%p3386_p0)  ;;  %v1145_v0 = vld [vmem:[%s4282_s27] sm:$0xff] (!%p3386_p0)  ;;  %s4889_s25 = sld [smem:[#allocation26_spill]] (!%p3386_p0)  ;;  %vm1156_vm0 = vcmask (!%p3386_p0), 130048   ;;  %v1146_v2 = vld [vmem:[%s4282_s27 + $0x8] sm:$0xff] (!%p3386_p0)  ;;  %v4054_v9 = vmov (!%p3386_p0), 0.0  }
  0x5a   : > { %1142 = sbr.rel (%p3386_p0) target bundleno = 803 (0x323), region = 124  ;;  %v1143_v7 = vld [vmem:[%s4297_s6] sm:$0xff] (!%p3386_p0)  ;;  %v1144_v8 = vld [vmem:[%s4297_s6 + $0x8] sm:$0xff] (!%p3386_p0)  ;;  %3602 = vmatprep.subr.bf16.mxu0 (!%p3386_p0), %v4054_v9  ;;  %vm4055_vm1 = vmmov (!%p3386_p0), 0   ;;  %v4056_v12 = vmov (!%p3386_p0), 0   ;;  %s4891_s6 = sld [smem:[#allocation30_spill]] (!%p3386_p0) }
  0x5b   : > { %v1170_v10 = vpack.c.bf16 (!%p3386_p0), %v1144_v8, %v1143_v7  ;;  %3604 = vmatprep.mubr.msk.bf16.mxu0 (!%p3386_p0), %vm4055_vm1, %v4054_v9  ;;  %v1215_v11 = vld [vmem:[%s4292_s22] sm:$0xff] (!%p3386_p0)  ;;  %3874 = vset.pattern.permute.xlu1 (!%p3386_p0), %v4056_v12  ;;  %v1216_v13 = vld [vmem:[%s4292_s22 + $0x8] sm:$0xff] (!%p3386_p0)  ;;  %vm1248_vm2 = vcmask (!%p3386_p0), 261120   ;;  %s4892_s27 = sld [smem:[#allocation31_spill]] (!%p3386_p0)  ;;  %s4893_s7 = sld [smem:[#allocation32_spill]] (!%p3386_p0) }
  0x5c   : > { %3875 = vset.pattern.permute.xlu0 (!%p3386_p0), %v4056_v12  ;;  %1221 = vperm.xlu1 (!%p3386_p0), %3874, %v1215_v11   ;;  %v1233_v32 = vld [vmem:[%s4302_s5] sm:$0xff] (!%p3386_p0)  ;;  %v1234_v36 = vld [vmem:[%s4302_s5 + $0x8] sm:$0xff] (!%p3386_p0) }
  0x5d   : > { %3603 = vmatpush3.bf16.msra.mxu0 (!%p3386_p0), %v1170_v10 }
  0x5f   : > { %s4890_s1 = scalar_lea.vmem (!%p3386_p0), %s4889_s25, %s4888_s12 }
  0x60   : > { %v3387_v1 = vld [vmem:[%s4890_s1] ss:$0 sm:$0xff] (!%p3386_p0)  ;;  %1226 = vperm.xlu1 (!%p3386_p0), %3874, %v1216_v13  }
  0x61   : > { %v1154_v3 = vmul.f32 %v3387_v1, %v1145_v0  ;;  %v1155_v4 = vmul.f32 %v3387_v1, %v1146_v2  ;;  %v3389_v35 = vld [vmem:[%s4891_s6] ss:$0 sm:$0xff] }
  0x62   : > { %v3390_v61 = vld [vmem:[%s4892_s27] ss:$0 sm:$0xff] }
  0x63   : > { %v1157_v5 = vsel %vm1156_vm0, %v1154_v3, 0.0  ;;  %v1160_v6 = vsel %vm1156_vm0, %v1155_v4, 0.0  ;;  %v3391_v63 = vld [vmem:[%s4893_s7] ss:$0 sm:$0xff] }
  0x64   : > { %1158 = vadd.xlane.f32.xlu0 %v1157_v5 }
  0x68   : > { %1161 = vadd.xlane.f32.xlu0 %v1160_v6 }
  0xdb   : > { %v1222_v23 = vpop.permute.xlu1 %1221 }
  0xdf   : > { %v1227_v31 = vpop.permute.xlu1 %1226 }
  0xf1   : > { %v1159_v14 = vpop.xlane.xlu0 %1158 }
  0xf2   : > { %v1163_v15 = vadd.f32 1e-10, %v1159_v14 }
  0xf4   : > { %3876 = vrcp.f32 %v1163_v15 }
  0xf5   : > { %v1162_v16 = vpop.xlane.xlu0 %1161 }
  0xf6   : > { %v1164_v17 = vadd.f32 1e-10, %v1162_v16 }
  0xf8   : > { %3878 = vrcp.f32 %v1164_v17 }
  0xfe   : > { %v3877_v18 = vpop.eup %3876 }
  0xff   : > { %v1167_v20 = vmul.f32 %v3877_v18, %v1154_v3 }
 0x102   : > { %v3879_v19 = vpop.eup %3878 }
 0x103   : > { %v1168_v21 = vmul.f32 %v3879_v19, %v1155_v4 }
 0x105   : > { %v1169_v22 = vpack.c.bf16 %v1168_v21, %v1167_v20 }
 0x107   : > { %3605 = vmatmul.mubr.msk.bf16.vlgmr.msra.gmra.mrb[0].mxu0 %vm1156_vm0, %v1169_v22 }
 0x1da   : > { %v1208_v24 = vpop.f32.mrb[0].mxu0 }
 0x1db   : > { %v1217_v25 = vsub.f32 %v1208_v24, %v1143_v7  ;;  %v3606_v26 = vpop.f32.mrb[1].mxu0 }
 0x1dc   : > { %v1211_v27 = vpop.f32.mrb[2].mxu0 }
 0x1dd   : > { %v1229_v28 = vmul.f32 %v1222_v23, %v1217_v25  ;;  %v1218_v29 = vsub.f32 %v1211_v27, %v1144_v8  ;;  %v3607_v30 = vpop.f32.mrb[3].mxu0 }
 0x1df   : > { %v1231_v33 = vadd.f32 %v1229_v28, %v1143_v7  ;;  %v1230_v34 = vmul.f32 %v1227_v31, %v1218_v29 }
 0x1e1   : > { %v1232_v37 = vadd.f32 %v1230_v34, %v1144_v8  ;;  %v1235_v38 = vadd.f32 %v1233_v32, %v1231_v33 }
 0x1e3   : > { %v1244_v39 = vadd.f32 %v3389_v35, %v1235_v38  ;;  %v1236_v40 = vadd.f32 %v1234_v36, %v1232_v37 }
 0x1e5   : > { %v1249_v41 = vsel %vm1248_vm2, %v1244_v39, 0.0  ;;  %v1245_v42 = vadd.f32 %v3389_v35, %v1236_v40 }
 0x1e6   : > { %1250 = vadd.xlane.f32.xlu0 %v1249_v41 }
 0x1e7   : > { %v1252_v43 = vsel %vm1248_vm2, %v1245_v42, 0.0 }
 0x1e8   : > { %1253 = vadd.xlane.f32.xlu1 %v1252_v43 }
 0x273   : > { %v1251_v44 = vpop.xlane.xlu0 %1250 }
 0x274   : > { %v1256_v45 = vmul.f32 0.03125, %v1251_v44 }
 0x275   : > { %v1254_v46 = vpop.xlane.xlu1 %1253 }
 0x276   : > { %v1258_v47 = vsub.f32 %v1244_v39, %v1256_v45  ;;  %v1257_v48 = vmul.f32 0.03125, %v1254_v46 }
 0x278   : > { %v1259_v49 = vsub.f32 %v1245_v42, %v1257_v48  ;;  %v1260_v50 = vmul.f32 %v1258_v47, %v1258_v47 }
 0x27a   : > { %v1262_v51 = vsel %vm1248_vm2, %v1260_v50, 0.0  ;;  %v1261_v52 = vmul.f32 %v1259_v49, %v1259_v49 }
 0x27b   : > { %1263 = vadd.xlane.f32.xlu0 %v1262_v51 }
 0x27c   : > { %v1265_v53 = vsel %vm1248_vm2, %v1261_v52, 0.0 }
 0x27f   : > { %1266 = vadd.xlane.f32.xlu0 %v1265_v53 }
 0x308   : > { %v1264_v54 = vpop.xlane.xlu0 %1263 }
 0x309   : > { %v1268_v55 = vmul.f32 0.03125, %v1264_v54 }
 0x30b   : > { %v1270_v56 = vadd.f32 1e-12, %v1268_v55 }
 0x30c   : > { %v1267_v57 = vpop.xlane.xlu0 %1266 }
 0x30d   : > { %3880 = vrsqrt.f32 %v1270_v56  ;;  %v1269_v58 = vmul.f32 0.03125, %v1267_v57 }
 0x30f   : > { %v1271_v59 = vadd.f32 1e-12, %v1269_v58 }
 0x311   : > { %3882 = vrsqrt.f32 %v1271_v59 }
 0x317   : > { %v3881_v60 = vpop.eup %3880 }
 0x318   : > { %v1274_v62 = vmul.f32 %v3881_v60, %v1258_v47 }
 0x31a   : > { %v1282_v0 = vmul.f32 %v3390_v61, %v1274_v62 }
 0x31b   : > { %v3883_v1 = vpop.eup %3882 }
 0x31c   : > { %v1290_v2 = vadd.f32 %v3391_v63, %v1282_v0  ;;  %v1275_v3 = vmul.f32 %v3883_v1, %v1259_v49 }
 0x31e   : > { %1292 = vst.msk [vmem:[%s4382_s11] sm:$0xff] %vm1248_vm2, %v1290_v2  ;;  %v1283_v4 = vmul.f32 %v3390_v61, %v1275_v3 }
 0x320   : > { %v1291_v5 = vadd.f32 %v3391_v63, %v1283_v4 }
 0x322   : > { %1293 = vst.msk [vmem:[%s4382_s11 + $0x8] sm:$0xff] %vm1248_vm2, %v1291_v5 }
 0x323 PF: > { %s4894_s13 = sld [smem:[#allocation20_spill]]  ;;  %v3884_v6 = vld [vmem:[%s4313_s26] sm:$0xff]   ;;  %v4057_v7 = vmov 0.0   ;;  %v3885_v8 = vld [vmem:[%s4313_s26 + $0x8] sm:$0xff]   ;;  %vm4058_vm3 = vmmov 0   ;;  %s4895_s9 = sld [smem:[#allocation22_spill]] }
 0x324   : > { %3616 = vmatprep.subr.bf16.mxu1 %v4057_v7  ;;  %3608 = vmatprep.subr.bf16.mxu0 %v4057_v7  ;;  %vm1331_vm4 = vcmask 261120   ;;  %v3396_v14 = vld [vmem:[%s4329_s21] ss:$0 sm:$0xff]  ;;  %s4896_s2 = sld [smem:[#allocation21_spill]]  ;;  %vm1498_vm5 = vcmask 64512   ;;  %s4897_s24 = sld [smem:[#allocation19_spill]] }
 0x325   : > { %3617 = vmatpush3.bf16.msra.mxu1 %v3884_v6  ;;  %3620 = vmatprep.mubr.msk.bf16.mxu1 %vm4058_vm3, %v4057_v7  ;;  %v4427_v10 = vld [vmem:[%s4382_s11] sm:$0xff]  ;;  %vm1546_vm6 = vcmask 130048   ;;  %s4898_s28 = sld [smem:[#allocation23_spill]]  ;;  %vm1620_vm7 = vcmask 1043456   ;;  %s4899_s30 = sld [smem:[#allocation40_spill]]  ;;  %vm2947_vm8 = vcmask 523264  }
 0x326   : > { %3618 = vmatprep.subr.bf16.mxu1 %v4057_v7  ;;  %3612 = vmatprep.mubr.msk.bf16.mxu0 %vm4058_vm3, %v4057_v7  ;;  %v3400_v56 = vld [vmem:[%s4334_s4] ss:$0 sm:$0xff]  ;;  %s4903_s22 = sld [smem:[#allocation42_spill]]  ;;  %s3054_s29 = sshll.u32 %s4382_s11, 4  ;;  %s4713_s29 = int_to_ptr.vmem [resolvable:$true] %s3054_s29 }
 0x329   : > { %v3886_v9 = vld [vmem:[%s4894_s13] sm:$0xff]   ;;  %v4430_v11 = vld [vmem:[%s4382_s11 + $0x8] sm:$0xff]  ;;  %3619 = vmatpush3.bf16.msra.mxu1 %v3885_v8  ;;  %v3892_v6 = vld [vmem:[%s4894_s13 + $0x10] sm:$0xff]  }
 0x32a   : > { %3609 = vmatpush3.bf16.msra.mxu0 %v3886_v9  ;;  %v3887_v12 = vld [vmem:[%s4894_s13 + $0x8] sm:$0xff]   ;;  %v4437_v13 = vpack.c.bf16 %v4430_v11, %v4427_v10  ;;  %3632 = vmatprep.subr.bf16.mxu1 %v4057_v7  ;;  %v3392_v16 = vld [vmem:[%s4895_s9] ss:$0 sm:$0xff]  ;;  %v3893_v8 = vld [vmem:[%s4894_s13 + $0x18] sm:$0xff]  }
 0x32b   : > { %3610 = vmatprep.subr.bf16.mxu0 %v4057_v7  ;;  %v3888_v31 = vld [vmem:[%s4896_s2] sm:$0xff]   ;;  %v3889_v32 = vld [vmem:[%s4896_s2 + $0x8] sm:$0xff]   ;;  %s4900_s25 = scalar_lea.vmem %s4899_s30, %s4272_s0 }
 0x32c   : > { %3621 = vmatmul.mubr.msk.bf16.vlgmr.msra.gmra.mrb[0].mxu1 %vm1331_vm4, %v4437_v13  ;;  %v4466_v33 = vld [vmem:[%s4897_s24] sm:$0xff]  ;;  %v4469_v35 = vld [vmem:[%s4897_s24 + $0x8] sm:$0xff]  ;;  %s4904_s6 = scalar_lea.vmem %s4903_s22, %s4272_s0 }
 0x32d   : > { %3634 = vmatprep.mubr.msk.bf16.mxu1 %vm4058_vm3, %v4057_v7  ;;  %v1616_v61 = vld [vmem:[%s4898_s28] sm:$0xf] }
 0x32e   : > { %3611 = vmatpush3.bf16.msra.mxu0 %v3887_v12  ;;  %v1622_v62 = vsel %vm1620_vm7, %v1616_v61, 0 }
 0x32f   : > { %3624 = vmatprep.subr.bf16.mxu0 %v4057_v7 }
 0x331   : > { %3613 = vmatmul.mubr.msk.bf16.vlgmr.msra.gmra.mrb[0].mxu0 %vm1331_vm4, %v4437_v13 }
 0x332   : > { %3628 = vmatprep.mubr.msk.bf16.mxu0 %vm4058_vm3, %v4057_v7  ;;  %3625 = vmatpush3.bf16.msra.mxu0 %v3888_v31  ;;  %v3426_v31 = vld [vmem:[%s4329_s21 + $0x1] ss:$0 sm:$0xff] }
 0x333   : > { %3626 = vmatprep.subr.bf16.mxu0 %v4057_v7 }
 0x336   : > { %3627 = vmatpush3.bf16.msra.mxu0 %v3889_v32 }
 0x337   : > { %3638 = vmatprep.subr.bf16.mxu0 %v4057_v7 }
 0x339   : > { %3629 = vmatmul.mubr.msk.bf16.vlgmr.msra.gmra.mrb[4].mxu0 %vm1331_vm4, %v4437_v13 }
 0x33a   : > { %3640 = vmatprep.mubr.msk.bf16.mxu0 %vm4058_vm3, %v4057_v7 }
 0x3ff   : > { %v1429_v15 = vpop.f32.mrb[0].mxu1 }
 0x400   : > { %v3622_v17 = vpop.f32.mrb[1].mxu1  ;;  %v1430_v20 = vadd.f32 %v3396_v14, %v1429_v15  ;;  %v3890_v15 = vld [vmem:[%s4313_s26 + $0x10] sm:$0xff]  }
 0x401   : > { %v1432_v18 = vpop.f32.mrb[2].mxu1 }
 0x402   : > { %v1433_v21 = vadd.f32 %v3396_v14, %v1432_v18  ;;  %v3623_v22 = vpop.f32.mrb[3].mxu1  ;;  %v3891_v18 = vld [vmem:[%s4313_s26 + $0x18] sm:$0xff]  }
 0x404   : > { %v1369_v19 = vpop.f32.mrb[0].mxu0  ;;  %v1497_v26 = vpack.c.bf16 %v1433_v21, %v1430_v20 }
 0x405   : > { %v1370_v23 = vadd.f32 %v3392_v16, %v1369_v19  ;;  %v3614_v24 = vpop.f32.mrb[1].mxu0  ;;  %v3421_v19 = vld [vmem:[%s4895_s9 + $0x1] ss:$0 sm:$0xff] }
 0x406   : > { %v1372_v25 = vpop.f32.mrb[2].mxu0  ;;  %v1503_v30 = vsel %vm1498_vm5, %v1497_v26, 0 }
 0x407   : > { %v1373_v27 = vadd.f32 %v3392_v16, %v1372_v25  ;;  %v3615_v28 = vpop.f32.mrb[3].mxu0  ;;  %3633 = vmatpush3.bf16.xpose.msra.mxu1 %v1503_v30 }
 0x408   : > { %3644 = vmatprep.subr.bf16.mxu1 %v4057_v7 }
 0x409   : > { %v1496_v29 = vpack.c.bf16 %v1373_v27, %v1370_v23 }
 0x40c   : > { %v1489_v53 = vpop.f32.mrb[4].mxu0 }
 0x40d   : > { %v3630_v54 = vpop.f32.mrb[5].mxu0  ;;  %v1490_v58 = vadd.f32 %v3400_v56, %v1489_v53 }
 0x40e   : > { %3635 = vmatmul.mubr.msk.bf16.vlgmr.msra.gmra.mrb[4].mxu1 %vm1498_vm5, %v1496_v29  ;;  %v1492_v55 = vpop.f32.mrb[6].mxu0 }
 0x40f   : > { %3646 = vmatprep.mubr.msk.bf16.mxu1 %vm4058_vm3, %v4057_v7  ;;  %v3631_v57 = vpop.f32.mrb[7].mxu0  ;;  %v1493_v59 = vadd.f32 %v3400_v56, %v1492_v55  ;;  %3645 = vmatpush3.bf16.msra.mxu1 %v1622_v62 }
 0x410   : > { %3658 = vmatprep.subr.bf16.mxu1 %v4057_v7 }
 0x411   : > { %v1570_v60 = vpack.c.bf16 %v1493_v59, %v1490_v58 }
 0x413   : > { %3639 = vmatpush3.bf16.msra.mxu0 %v1570_v60 }
 0x414   : > { %3650 = vmatprep.subr.bf16.mxu0 %v4057_v7 }
 0x4e1   : > { %v1539_v34 = vpop.f32.mrb[4].mxu1 }
 0x4e2   : > { %v1540_v36 = vadd.f32 %v1539_v34, %v4466_v33  ;;  %v3636_v37 = vpop.f32.mrb[5].mxu1 }
 0x4e3   : > { %v1542_v38 = vpop.f32.mrb[6].mxu1 }
 0x4e4   : > { %v1543_v39 = vadd.f32 %v1542_v38, %v4469_v35  ;;  %v3637_v40 = vpop.f32.mrb[7].mxu1  ;;  %v1547_v41 = vsel %vm1546_vm6, %v1540_v36, -inf }
 0x4e5   : > { %1548 = vmax.xlane.f32.xlu0 %v1547_v41 }
 0x4e6   : > { %v1550_v42 = vsel %vm1546_vm6, %v1543_v39, -inf }
 0x4e9   : > { %1551 = vmax.xlane.f32.xlu0 %v1550_v42  ;;  %v3894_v42 = vld [vmem:[%s4896_s2 + $0x10] sm:$0xff]  }
 0x572   : > { %v1549_v43 = vpop.xlane.xlu0 %1548 }
 0x573   : > { %v1553_v44 = vsub.f32 %v1540_v36, %v1549_v43  ;;  %v3895_v43 = vld [vmem:[%s4896_s2 + $0x18] sm:$0xff]  }
 0x575   : > { %v1555_v45 = vmul.f32 1.442695, %v1553_v44 }
 0x576   : > { %v1552_v46 = vpop.xlane.xlu0 %1551 }
 0x577   : > { %3914 = vpow2.f32 %v1555_v45  ;;  %v1554_v47 = vsub.f32 %v1543_v39, %v1552_v46 }
 0x579   : > { %v1557_v48 = vmul.f32 1.442695, %v1554_v47 }
 0x57b   : > { %3916 = vpow2.f32 %v1557_v48 }
 0x581   : > { %v3915_v49 = vpop.eup %3914 }
 0x582   : > { %v1559_v50 = vsel %vm1546_vm6, %v3915_v49, 0.0 }
 0x583   : > { %1560 = vadd.xlane.f32.xlu1 %v1559_v50 }
 0x585   : > { %v3917_v51 = vpop.eup %3916 }
 0x586   : > { %v1562_v52 = vsel %vm1546_vm6, %v3917_v51, 0.0 }
 0x587   : > { %1563 = vadd.xlane.f32.xlu1 %v1562_v52 }
 0x610   : > { %v1561_v63 = vpop.xlane.xlu1 %1560 }
 0x611   : > { %3918 = vrcp.f32 %v1561_v63 }
 0x614   : > { %v1564_v0 = vpop.xlane.xlu1 %1563 }
 0x615   : > { %3920 = vrcp.f32 %v1564_v0 }
 0x61b   : > { %v3919_v1 = vpop.eup %3918 }
 0x61c   : > { %v1567_v3 = vmul.f32 %v3919_v1, %v3915_v49  ;;  %v3431_v1 = vld [vmem:[%s4334_s4 + $0x1] ss:$0 sm:$0xff] }
 0x61f   : > { %v3921_v2 = vpop.eup %3920 }
 0x620   : > { %v1568_v4 = vmul.f32 %v3921_v2, %v3917_v51 }
 0x622   : > { %v1569_v5 = vpack.c.bf16 %v1568_v4, %v1567_v3 }
 0x624   : > { %3641 = vmatmul.mubr.msk.bf16.vlgmr.msra.gmra.mrb[8].mxu0 %vm1546_vm6, %v1569_v5 }
 0x625   : > { %3654 = vmatprep.mubr.msk.bf16.mxu0 %vm4058_vm3, %v4057_v7  ;;  %3651 = vmatpush3.bf16.msra.mxu0 %v3892_v6  ;;  %v3437_v6 = vld [vmem:[%s4898_s28 + $0x4] sm:$0xf] }
 0x626   : > { %3652 = vmatprep.subr.bf16.mxu0 %v4057_v7 }
 0x629   : > { %3653 = vmatpush3.bf16.msra.mxu0 %v3893_v8  ;;  %v1995_v8 = vsel %vm1620_vm7, %v3437_v6, 0 }
 0x62a   : > { %3666 = vmatprep.subr.bf16.mxu0 %v4057_v7 }
 0x62c   : > { %3655 = vmatmul.mubr.msk.bf16.vlgmr.msra.gmra.mrb[12].mxu0 %vm1331_vm4, %v4437_v13 }
 0x62d   : > { %3670 = vmatprep.mubr.msk.bf16.mxu0 %vm4058_vm3, %v4057_v7  ;;  %3667 = vmatpush3.bf16.msra.mxu0 %v3894_v42 }
 0x62e   : > { %3668 = vmatprep.subr.bf16.mxu0 %v4057_v7 }
 0x631   : > { %3669 = vmatpush3.bf16.msra.mxu0 %v3895_v43 }
 0x632   : > { %3680 = vmatprep.subr.bf16.mxu0 %v4057_v7 }
 0x634   : > { %3671 = vmatmul.mubr.msk.bf16.vlgmr.msra.gmra.mrb[16].mxu0 %vm1331_vm4, %v4437_v13 }
 0x635   : > { %3682 = vmatprep.mubr.msk.bf16.mxu0 %vm4058_vm3, %v4057_v7 }
 0x6f7   : > { %v1608_v9 = vpop.f32.mrb[8].mxu0 }
 0x6f8   : > { %v3642_v12 = vpop.f32.mrb[9].mxu0 }
 0x6f9   : > { %v1611_v14 = vpop.f32.mrb[10].mxu0 }
 0x6fa   : > { %v1615_v16 = vpack.c.bf16 %v1611_v14, %v1608_v9  ;;  %v3643_v17 = vpop.f32.mrb[11].mxu0 }
 0x6fc   : > { %3647 = vmatmul.mubr.msk.bf16.vlgmr.msra.gmra.mrb[8].mxu1 %vm1498_vm5, %v1615_v16 }
 0x6fd   : > { %3659 = vmatpush3.bf16.msra.mxu1 %v3890_v15  ;;  %3662 = vmatprep.mubr.msk.bf16.mxu1 %vm4058_vm3, %v4057_v7 }
 0x6fe   : > { %3660 = vmatprep.subr.bf16.mxu1 %v4057_v7 }
 0x6ff   : > { %v1742_v20 = vpop.f32.mrb[12].mxu0 }
 0x700   : > { %v1743_v21 = vadd.f32 %v3421_v19, %v1742_v20  ;;  %v3656_v22 = vpop.f32.mrb[13].mxu0  ;;  %v3899_v20 = vld [vmem:[%s4894_s13 + $0x28] sm:$0xff]  }
 0x701   : > { %3661 = vmatpush3.bf16.msra.mxu1 %v3891_v18  ;;  %v1745_v23 = vpop.f32.mrb[14].mxu0 }
 0x702   : > { %3674 = vmatprep.subr.bf16.mxu1 %v4057_v7  ;;  %v1746_v24 = vadd.f32 %v3421_v19, %v1745_v23  ;;  %v3657_v25 = vpop.f32.mrb[15].mxu0  ;;  %v3898_v19 = vld [vmem:[%s4894_s13 + $0x20] sm:$0xff]  }
 0x704   : > { %3663 = vmatmul.mubr.msk.bf16.vlgmr.msra.gmra.mrb[12].mxu1 %vm1331_vm4, %v4437_v13  ;;  %v1871_v26 = vpack.c.bf16 %v1746_v24, %v1743_v21  ;;  %v3896_v24 = vld [vmem:[%s4313_s26 + $0x20] sm:$0xff]  }
 0x705   : > { %3676 = vmatprep.mubr.msk.bf16.mxu1 %vm4058_vm3, %v4057_v7 }
 0x707   : > { %v1864_v62 = vpop.f32.mrb[16].mxu0 }
 0x708   : > { %v3672_v63 = vpop.f32.mrb[17].mxu0  ;;  %v1865_v3 = vadd.f32 %v3431_v1, %v1864_v62 }
 0x709   : > { %v1867_v0 = vpop.f32.mrb[18].mxu0 }
 0x70a   : > { %v3673_v2 = vpop.f32.mrb[19].mxu0  ;;  %v1868_v4 = vadd.f32 %v3431_v1, %v1867_v0 }
 0x70c   : > { %v1943_v5 = vpack.c.bf16 %v1868_v4, %v1865_v3 }
 0x70e   : > { %3681 = vmatpush3.bf16.msra.mxu0 %v1943_v5 }
 0x70f   : > { %3692 = vmatprep.subr.bf16.mxu0 %v4057_v7 }
 0x7cf   : > { %v4505_v27 = vpop.f32.mrb[8].mxu1 }
 0x7d0   : > { %v3648_v28 = vpop.f32.mrb[9].mxu1 }
 0x7d1   : > { %v4507_v29 = vpop.f32.mrb[10].mxu1  ;;  %v3897_v28 = vld [vmem:[%s4313_s26 + $0x28] sm:$0xff]  }
 0x7d2   : > { %v3649_v30 = vpop.f32.mrb[11].mxu1 }
 0x7d3   : > { %v3452_v30 = vld [vmem:[%s4895_s9 + $0x2] ss:$0 sm:$0xff] }
 0x7d7   : > { %v1803_v32 = vpop.f32.mrb[12].mxu1 }
 0x7d8   : > { %v3664_v34 = vpop.f32.mrb[13].mxu1  ;;  %v1804_v37 = vadd.f32 %v3426_v31, %v1803_v32 }
 0x7d9   : > { %v1806_v36 = vpop.f32.mrb[14].mxu1 }
 0x7da   : > { %v1807_v38 = vadd.f32 %v3426_v31, %v1806_v36  ;;  %v3665_v39 = vpop.f32.mrb[15].mxu1 }
 0x7dc   : > { %v1872_v40 = vpack.c.bf16 %v1807_v38, %v1804_v37 }
 0x7de   : > { %v1877_v41 = vsel %vm1498_vm5, %v1872_v40, 0  ;;  %v3407_v40 = vld [vmem:[%s4900_s25] ss:$0 sm:$0xff] }
 0x7df   : > { %3675 = vmatpush3.bf16.xpose.msra.mxu1 %v1877_v41  ;;  %v1671_v41 = vadd.f32 %v3407_v40, %v4505_v27  ;;  %v1672_v43 = vadd.f32 %v3407_v40, %v4507_v29  ;;  %v3900_v29 = vld [vmem:[%s4896_s2 + $0x20] sm:$0xff]  }
 0x7e0   : > { %3686 = vmatprep.subr.bf16.mxu1 %v4057_v7 }
 0x7e6   : > { %3677 = vmatmul.mubr.msk.bf16.vlgmr.msra.gmra.mrb[16].mxu1 %vm1498_vm5, %v1871_v26 }
 0x7e7   : > { %3688 = vmatprep.mubr.msk.bf16.mxu1 %vm4058_vm3, %v4057_v7  ;;  %3687 = vmatpush3.bf16.msra.mxu1 %v1995_v8 }
 0x7e8   : > { %3700 = vmatprep.subr.bf16.mxu1 %v4057_v7 }
 0x8b9   : > { %v1913_v44 = vpop.f32.mrb[16].mxu1 }
 0x8ba   : > { %v1914_v45 = vadd.f32 %v1913_v44, %v4466_v33  ;;  %v3678_v46 = vpop.f32.mrb[17].mxu1 }
 0x8bb   : > { %v1916_v47 = vpop.f32.mrb[18].mxu1 }
 0x8bc   : > { %v1917_v48 = vadd.f32 %v1916_v47, %v4469_v35  ;;  %v3679_v49 = vpop.f32.mrb[19].mxu1  ;;  %v1920_v50 = vsel %vm1546_vm6, %v1914_v45, -inf }
 0x8bd   : > { %1921 = vmax.xlane.f32.xlu0 %v1920_v50  ;;  %v3457_v49 = vld [vmem:[%s4329_s21 + $0x2] ss:$0 sm:$0xff] }
 0x8be   : > { %v1923_v51 = vsel %vm1546_vm6, %v1917_v48, -inf }
 0x8bf   : > { %1924 = vmax.xlane.f32.xlu1 %v1923_v51 }
 0x94a   : > { %v1922_v52 = vpop.xlane.xlu0 %1921 }
 0x94b   : > { %v1926_v53 = vsub.f32 %v1914_v45, %v1922_v52 }
 0x94c   : > { %v1925_v54 = vpop.xlane.xlu1 %1924 }
 0x94d   : > { %v1928_v55 = vmul.f32 1.442695, %v1926_v53  ;;  %v1927_v56 = vsub.f32 %v1917_v48, %v1925_v54 }
 0x94f   : > { %3922 = vpow2.f32 %v1928_v55  ;;  %v1930_v57 = vmul.f32 1.442695, %v1927_v56 }
 0x951   : > { %3924 = vpow2.f32 %v1930_v57  ;;  %v3901_v57 = vld [vmem:[%s4896_s2 + $0x28] sm:$0xff]  }
 0x959   : > { %v3923_v58 = vpop.eup %3922 }
 0x95a   : > { %v1932_v59 = vsel %vm1546_vm6, %v3923_v58, 0.0 }
 0x95b   : > { %v3925_v60 = vpop.eup %3924  ;;  %1933 = vadd.xlane.f32.xlu0 %v1932_v59 }
 0x95c   : > { %v1935_v61 = vsel %vm1546_vm6, %v3925_v60, 0.0 }
 0x95d   : > { %1936 = vadd.xlane.f32.xlu1 %v1935_v61 }
 0x9e8   : > { %v1934_v9 = vpop.xlane.xlu0 %1933 }
 0x9e9   : > { %3926 = vrcp.f32 %v1934_v9 }
 0x9ea   : > { %v1937_v12 = vpop.xlane.xlu1 %1936 }
 0x9eb   : > { %3928 = vrcp.f32 %v1937_v12 }
 0x9f3   : > { %v3927_v14 = vpop.eup %3926 }
 0x9f4   : > { %v1940_v16 = vmul.f32 %v3927_v14, %v3923_v58 }
 0x9f5   : > { %v3929_v15 = vpop.eup %3928 }
 0x9f6   : > { %v1941_v17 = vmul.f32 %v3929_v15, %v3925_v60 }
 0x9f8   : > { %v1942_v18 = vpack.c.bf16 %v1941_v17, %v1940_v16 }
 0x9fa   : > { %3683 = vmatmul.mubr.msk.bf16.vlgmr.msra.gmra.mrb[20].mxu0 %vm1546_vm6, %v1942_v18 }
 0x9fb   : > { %3696 = vmatprep.mubr.msk.bf16.mxu0 %vm4058_vm3, %v4057_v7  ;;  %3693 = vmatpush3.bf16.msra.mxu0 %v3898_v19  ;;  %v3462_v19 = vld [vmem:[%s4334_s4 + $0x2] ss:$0 sm:$0xff] }
 0x9fc   : > { %3694 = vmatprep.subr.bf16.mxu0 %v4057_v7 }
 0x9ff   : > { %3695 = vmatpush3.bf16.msra.mxu0 %v3899_v20 }
 0xa00   : > { %3708 = vmatprep.subr.bf16.mxu0 %v4057_v7 }
 0xa02   : > { %3697 = vmatmul.mubr.msk.bf16.vlgmr.msra.gmra.mrb[24].mxu0 %vm1331_vm4, %v4437_v13 }
 0xa03   : > { %3712 = vmatprep.mubr.msk.bf16.mxu0 %vm4058_vm3, %v4057_v7  ;;  %3709 = vmatpush3.bf16.msra.mxu0 %v3900_v29 }
 0xa04   : > { %3710 = vmatprep.subr.bf16.mxu0 %v4057_v7 }
 0xa07   : > { %3711 = vmatpush3.bf16.msra.mxu0 %v3901_v57 }
 0xa08   : > { %3722 = vmatprep.subr.bf16.mxu0 %v4057_v7 }
 0xa0a   : > { %3713 = vmatmul.mubr.msk.bf16.vlgmr.msra.gmra.mrb[28].mxu0 %vm1331_vm4, %v4437_v13 }
 0xa0b   : > { %3724 = vmatprep.mubr.msk.bf16.mxu0 %vm4058_vm3, %v4057_v7 }
 0xacd   : > { %v1981_v21 = vpop.f32.mrb[20].mxu0 }
 0xace   : > { %v3684_v22 = vpop.f32.mrb[21].mxu0 }
 0xacf   : > { %v1984_v23 = vpop.f32.mrb[22].mxu0 }
 0xad0   : > { %v1988_v25 = vpack.c.bf16 %v1984_v23, %v1981_v21  ;;  %v3685_v26 = vpop.f32.mrb[23].mxu0 }
 0xad2   : > { %3689 = vmatmul.mubr.msk.bf16.vlgmr.msra.gmra.mrb[20].mxu1 %vm1498_vm5, %v1988_v25 }
 0xad3   : > { %3701 = vmatpush3.bf16.msra.mxu1 %v3896_v24  ;;  %3704 = vmatprep.mubr.msk.bf16.mxu1 %vm4058_vm3, %v4057_v7  ;;  %v3468_v24 = vld [vmem:[%s4898_s28 + $0x8] sm:$0xf] }
 0xad4   : > { %3702 = vmatprep.subr.bf16.mxu1 %v4057_v7  ;;  %v2362_v25 = vsel %vm1620_vm7, %v3468_v24, 0 }
 0xad5   : > { %v2109_v31 = vpop.f32.mrb[24].mxu0 }
 0xad6   : > { %v2110_v32 = vadd.f32 %v3452_v30, %v2109_v31  ;;  %v3698_v34 = vpop.f32.mrb[25].mxu0 }
 0xad7   : > { %3703 = vmatpush3.bf16.msra.mxu1 %v3897_v28  ;;  %v2112_v36 = vpop.f32.mrb[26].mxu0 }
 0xad8   : > { %3716 = vmatprep.subr.bf16.mxu1 %v4057_v7  ;;  %v2113_v37 = vadd.f32 %v3452_v30, %v2112_v36  ;;  %v3699_v38 = vpop.f32.mrb[27].mxu0 }
 0xad9   : > { %v3905_v38 = vld [vmem:[%s4894_s13 + $0x38] sm:$0xff]  }
 0xada   : > { %3705 = vmatmul.mubr.msk.bf16.vlgmr.msra.gmra.mrb[24].mxu1 %vm1331_vm4, %v4437_v13  ;;  %v2238_v39 = vpack.c.bf16 %v2113_v37, %v2110_v32  ;;  %v3904_v37 = vld [vmem:[%s4894_s13 + $0x30] sm:$0xff]   ;;  %s4908_s13 = sld [smem:[#allocation6_spill]] }
 0xadb   : > { %3718 = vmatprep.mubr.msk.bf16.mxu1 %vm4058_vm3, %v4057_v7 }
 0xadd   : > { %v2231_v16 = vpop.f32.mrb[28].mxu0 }
 0xade   : > { %v3714_v17 = vpop.f32.mrb[29].mxu0  ;;  %v2232_v21 = vadd.f32 %v3462_v19, %v2231_v16 }
 0xadf   : > { %v2234_v18 = vpop.f32.mrb[30].mxu0 }
 0xae0   : > { %v3715_v20 = vpop.f32.mrb[31].mxu0  ;;  %v2235_v22 = vadd.f32 %v3462_v19, %v2234_v18 }
 0xae2   : > { %v2310_v23 = vpack.c.bf16 %v2235_v22, %v2232_v21 }
 0xae4   : > { %3723 = vmatpush3.bf16.msra.mxu0 %v2310_v23 }
 0xae5   : > { %3734 = vmatprep.subr.bf16.mxu0 %v4057_v7 }
 0xba5   : > { %v2031_v42 = vpop.f32.mrb[20].mxu1 }
 0xba6   : > { %v4564_v44 = vadd.f32 %v2031_v42, %v1671_v41  ;;  %v3690_v45 = vpop.f32.mrb[21].mxu1  ;;  %v3902_v42 = vld [vmem:[%s4313_s26 + $0x30] sm:$0xff]  }
 0xba7   : > { %v2034_v46 = vpop.f32.mrb[22].mxu1 }
 0xba8   : > { %v4566_v47 = vadd.f32 %v2034_v46, %v1672_v43  ;;  %v3691_v48 = vpop.f32.mrb[23].mxu1  ;;  %v3903_v46 = vld [vmem:[%s4313_s26 + $0x38] sm:$0xff]   ;;  %s4911_s26 = sld [smem:[#allocation48_spill]] }
 0xba9   : > { %v3483_v48 = vld [vmem:[%s4895_s9 + $0x3] ss:$0 sm:$0xff] }
 0xbad   : > { %v2170_v50 = vpop.f32.mrb[24].mxu1 }
 0xbae   : > { %v3706_v51 = vpop.f32.mrb[25].mxu1  ;;  %v2171_v53 = vadd.f32 %v3457_v49, %v2170_v50 }
 0xbaf   : > { %v2173_v52 = vpop.f32.mrb[26].mxu1 }
 0xbb0   : > { %v2174_v54 = vadd.f32 %v3457_v49, %v2173_v52  ;;  %v3707_v55 = vpop.f32.mrb[27].mxu1 }
 0xbb2   : > { %v2239_v27 = vpack.c.bf16 %v2174_v54, %v2171_v53 }
 0xbb4   : > { %v2244_v56 = vsel %vm1498_vm5, %v2239_v27, 0 }
 0xbb5   : > { %3717 = vmatpush3.bf16.xpose.msra.mxu1 %v2244_v56 }
 0xbb6   : > { %3728 = vmatprep.subr.bf16.mxu1 %v4057_v7 }
 0xbbc   : > { %3719 = vmatmul.mubr.msk.bf16.vlgmr.msra.gmra.mrb[28].mxu1 %vm1498_vm5, %v2238_v39 }
 0xbbd   : > { %3730 = vmatprep.mubr.msk.bf16.mxu1 %vm4058_vm3, %v4057_v7  ;;  %3729 = vmatpush3.bf16.msra.mxu1 %v2362_v25 }
 0xbbe   : > { %3742 = vmatprep.subr.bf16.mxu1 %v4057_v7 }
 0xc8f   : > { %v2280_v58 = vpop.f32.mrb[28].mxu1 }
 0xc90   : > { %v2281_v59 = vadd.f32 %v2280_v58, %v4466_v33  ;;  %v3720_v60 = vpop.f32.mrb[29].mxu1 }
 0xc91   : > { %v2283_v61 = vpop.f32.mrb[30].mxu1  ;;  %v3488_v60 = vld [vmem:[%s4329_s21 + $0x3] ss:$0 sm:$0xff]  ;;  %s4912_s21 = smov %s4911_s26 }
 0xc92   : > { %v2284_v62 = vadd.f32 %v2283_v61, %v4469_v35  ;;  %v3721_v63 = vpop.f32.mrb[31].mxu1  ;;  %v2287_v0 = vsel %vm1546_vm6, %v2281_v59, -inf }
 0xc93   : > { %2288 = vmax.xlane.f32.xlu0 %v2287_v0 }
 0xc94   : > { %v2290_v1 = vsel %vm1546_vm6, %v2284_v62, -inf }
 0xc95   : > { %2291 = vmax.xlane.f32.xlu1 %v2290_v1 }
 0xd20   : > { %v2289_v2 = vpop.xlane.xlu0 %2288 }
 0xd21   : > { %v2293_v3 = vsub.f32 %v2281_v59, %v2289_v2 }
 0xd22   : > { %v2292_v4 = vpop.xlane.xlu1 %2291 }
 0xd23   : > { %v2295_v5 = vmul.f32 1.442695, %v2293_v3  ;;  %v2294_v6 = vsub.f32 %v2284_v62, %v2292_v4 }
 0xd25   : > { %3930 = vpow2.f32 %v2295_v5  ;;  %v2297_v8 = vmul.f32 1.442695, %v2294_v6 }
 0xd27   : > { %3932 = vpow2.f32 %v2297_v8 }
 0xd2f   : > { %v3931_v9 = vpop.eup %3930 }
 0xd30   : > { %v2299_v12 = vsel %vm1546_vm6, %v3931_v9, 0.0 }
 0xd31   : > { %v3933_v14 = vpop.eup %3932  ;;  %2300 = vadd.xlane.f32.xlu0 %v2299_v12 }
 0xd32   : > { %v2302_v15 = vsel %vm1546_vm6, %v3933_v14, 0.0 }
 0xd33   : > { %2303 = vadd.xlane.f32.xlu1 %v2302_v15 }
 0xdbe   : > { %v2301_v26 = vpop.xlane.xlu0 %2300 }
 0xdbf   : > { %3934 = vrcp.f32 %v2301_v26 }
 0xdc0   : > { %v2304_v28 = vpop.xlane.xlu1 %2303 }
 0xdc1   : > { %3936 = vrcp.f32 %v2304_v28  ;;  %v3493_v28 = vld [vmem:[%s4334_s4 + $0x3] ss:$0 sm:$0xff]  ;;  %s4901_s4 = sld [smem:[#allocation41_spill]] }
 0xdc7   : > { %s4902_s1 = scalar_lea.vmem %s4901_s4, %s4272_s0 }
 0xdc9   : > { %v3935_v30 = vpop.eup %3934 }
 0xdca   : > { %v2307_v32 = vmul.f32 %v3935_v30, %v3931_v9 }
 0xdcb   : > { %v3937_v31 = vpop.eup %3936 }
 0xdcc   : > { %v2308_v34 = vmul.f32 %v3937_v31, %v3933_v14 }
 0xdce   : > { %v2309_v36 = vpack.c.bf16 %v2308_v34, %v2307_v32 }
 0xdd0   : > { %3725 = vmatmul.mubr.msk.bf16.vlgmr.msra.gmra.mrb[32].mxu0 %vm1546_vm6, %v2309_v36  ;;  %v3499_v36 = vld [vmem:[%s4898_s28 + $0xc] sm:$0xf] }
 0xdd1   : > { %3738 = vmatprep.mubr.msk.bf16.mxu0 %vm4058_vm3, %v4057_v7  ;;  %3735 = vmatpush3.bf16.msra.mxu0 %v3904_v37  ;;  %v2729_v37 = vsel %vm1620_vm7, %v3499_v36, 0 }
 0xdd2   : > { %3736 = vmatprep.subr.bf16.mxu0 %v4057_v7 }
 0xdd5   : > { %3737 = vmatpush3.bf16.msra.mxu0 %v3905_v38 }
 0xdd6   : > { %3750 = vmatprep.subr.bf16.mxu0 %v4057_v7 }
 0xdd8   : > { %3739 = vmatmul.mubr.msk.bf16.vlgmr.msra.gmra.mrb[36].mxu0 %vm1331_vm4, %v4437_v13 }
 0xdd9   : > { %3754 = vmatprep.mubr.msk.bf16.mxu0 %vm4058_vm3, %v4057_v7 }
 0xea3   : > { %v2348_v39 = vpop.f32.mrb[32].mxu0 }
 0xea4   : > { %v3726_v40 = vpop.f32.mrb[33].mxu0 }
 0xea5   : > { %v2351_v41 = vpop.f32.mrb[34].mxu0 }
 0xea6   : > { %v2355_v43 = vpack.c.bf16 %v2351_v41, %v2348_v39  ;;  %v3727_v45 = vpop.f32.mrb[35].mxu0 }
 0xea8   : > { %3731 = vmatmul.mubr.msk.bf16.vlgmr.msra.gmra.mrb[32].mxu1 %vm1498_vm5, %v2355_v43 }
 0xea9   : > { %3743 = vmatpush3.bf16.msra.mxu1 %v3902_v42  ;;  %3746 = vmatprep.mubr.msk.bf16.mxu1 %vm4058_vm3, %v4057_v7 }
 0xeaa   : > { %3744 = vmatprep.subr.bf16.mxu1 %v4057_v7 }
 0xeab   : > { %v2476_v49 = vpop.f32.mrb[36].mxu0 }
 0xeac   : > { %v2477_v50 = vadd.f32 %v3483_v48, %v2476_v49  ;;  %v3740_v51 = vpop.f32.mrb[37].mxu0 }
 0xead   : > { %3745 = vmatpush3.bf16.msra.mxu1 %v3903_v46  ;;  %v2479_v52 = vpop.f32.mrb[38].mxu0 }
 0xeae   : > { %3758 = vmatprep.subr.bf16.mxu1 %v4057_v7  ;;  %v2480_v53 = vadd.f32 %v3483_v48, %v2479_v52  ;;  %v3741_v54 = vpop.f32.mrb[39].mxu0 }
 0xeb0   : > { %3747 = vmatmul.mubr.msk.bf16.vlgmr.msra.gmra.mrb[36].mxu1 %vm1331_vm4, %v4437_v13  ;;  %v2605_v55 = vpack.c.bf16 %v2480_v53, %v2477_v50 }
 0xeb1   : > { %3760 = vmatprep.mubr.msk.bf16.mxu1 %vm4058_vm3, %v4057_v7 }
 0xf7b   : > { %v2398_v27 = vpop.f32.mrb[32].mxu1 }
 0xf7c   : > { %v4617_v56 = vadd.f32 %v2398_v27, %v4564_v44  ;;  %v3732_v29 = vpop.f32.mrb[33].mxu1  ;;  %v3906_v44 = vld [vmem:[%s4896_s2 + $0x30] sm:$0xff]  }
 0xf7d   : > { %v2401_v57 = vpop.f32.mrb[34].mxu1  ;;  %3751 = vmatpush3.bf16.msra.mxu0 %v3906_v44  ;;  %v3909_v44 = vld [vmem:[%s4357_s14 + $0x8] sm:$0xff]  }
 0xf7e   : > { %v4620_v58 = vadd.f32 %v2401_v57, %v4566_v47  ;;  %v3733_v59 = vpop.f32.mrb[35].mxu1  ;;  %v3907_v47 = vld [vmem:[%s4896_s2 + $0x38] sm:$0xff]   ;;  %3752 = vmatprep.subr.bf16.mxu0 %v4057_v7 }
 0xf81   : > { %3753 = vmatpush3.bf16.msra.mxu0 %v3907_v47 }
 0xf82   : > { %3764 = vmatprep.subr.bf16.mxu0 %v4057_v7 }
 0xf83   : > { %v2537_v61 = vpop.f32.mrb[36].mxu1 }
 0xf84   : > { %v3748_v62 = vpop.f32.mrb[37].mxu1  ;;  %v2538_v0 = vadd.f32 %v3488_v60, %v2537_v61  ;;  %3755 = vmatmul.mubr.msk.bf16.vlgmr.msra.gmra.mrb[40].mxu0 %vm1331_vm4, %v4437_v13 }
 0xf85   : > { %v2540_v63 = vpop.f32.mrb[38].mxu1  ;;  %3766 = vmatprep.mubr.msk.bf16.mxu0 %vm4058_vm3, %v4057_v7 }
 0xf86   : > { %v2541_v1 = vadd.f32 %v3488_v60, %v2540_v63  ;;  %v3749_v2 = vpop.f32.mrb[39].mxu1 }
 0xf88   : > { %v2606_v3 = vpack.c.bf16 %v2541_v1, %v2538_v0 }
 0xf8a   : > { %v2611_v4 = vsel %vm1498_vm5, %v2606_v3, 0 }
 0xf8b   : > { %3759 = vmatpush3.bf16.xpose.msra.mxu1 %v2611_v4 }
 0xf8c   : > { %3770 = vmatprep.subr.bf16.mxu1 %v4057_v7 }
 0xf92   : > { %3761 = vmatmul.mubr.msk.bf16.vlgmr.msra.gmra.mrb[40].mxu1 %vm1498_vm5, %v2605_v55 }
 0xf93   : > { %3772 = vmatprep.mubr.msk.bf16.mxu1 %vm4058_vm3, %v4057_v7  ;;  %3771 = vmatpush3.bf16.msra.mxu1 %v2729_v37 }
 0xf94   : > { %3784 = vmatprep.subr.bf16.mxu1 %v4057_v7 }
0x1057   : > { %v2598_v24 = vpop.f32.mrb[40].mxu0 }
0x1058   : > { %v3756_v25 = vpop.f32.mrb[41].mxu0  ;;  %v2599_v31 = vadd.f32 %v3493_v28, %v2598_v24  ;;  %v3912_v24 = vld [vmem:[%s4371_s17 + $0x10] sm:$0xff]  }
0x1059   : > { %v2601_v26 = vpop.f32.mrb[42].mxu0  ;;  %v3913_v25 = vld [vmem:[%s4371_s17 + $0x18] sm:$0xff]  }
0x105a   : > { %v3757_v30 = vpop.f32.mrb[43].mxu0  ;;  %v2602_v32 = vadd.f32 %v3493_v28, %v2601_v26  ;;  %v3503_v26 = vld [vmem:[%s1123_s15] ss:$0 sm:$0xff] }
0x105c   : > { %v2677_v34 = vpack.c.bf16 %v2602_v32, %v2599_v31 }
0x105e   : > { %3765 = vmatpush3.bf16.msra.mxu0 %v2677_v34 }
0x105f   : > { %3776 = vmatprep.subr.bf16.mxu0 %v4057_v7 }
0x1065   : > { %v2647_v5 = vpop.f32.mrb[40].mxu1 }
0x1066   : > { %v2648_v6 = vadd.f32 %v2647_v5, %v4466_v33  ;;  %v3762_v8 = vpop.f32.mrb[41].mxu1 }
0x1067   : > { %v2650_v9 = vpop.f32.mrb[42].mxu1 }
0x1068   : > { %v2651_v12 = vadd.f32 %v2650_v9, %v4469_v35  ;;  %v3763_v14 = vpop.f32.mrb[43].mxu1  ;;  %v2654_v15 = vsel %vm1546_vm6, %v2648_v6, -inf }
0x1069   : > { %2655 = vmax.xlane.f32.xlu0 %v2654_v15  ;;  %v3501_v15 = vld [vmem:[%s4902_s1] ss:$0 sm:$0xff]  ;;  %s4059_s1 = smov [#allocation2]  }
0x106a   : > { %v2657_v16 = vsel %vm1546_vm6, %v2651_v12, -inf }
0x106b   : > { %2658 = vmax.xlane.f32.xlu1 %v2657_v16 }
0x10f6   : > { %v2656_v17 = vpop.xlane.xlu0 %2655 }
0x10f7   : > { %v2660_v18 = vsub.f32 %v2648_v6, %v2656_v17 }
0x10f8   : > { %v2659_v13 = vpop.xlane.xlu1 %2658 }
0x10f9   : > { %v2662_v19 = vmul.f32 1.442695, %v2660_v18  ;;  %v2661_v20 = vsub.f32 %v2651_v12, %v2659_v13 }
0x10fb   : > { %3938 = vpow2.f32 %v2662_v19  ;;  %v2664_v21 = vmul.f32 1.442695, %v2661_v20  ;;  %v3502_v19 = vld [vmem:[%s4904_s6] ss:$0 sm:$0xff] }
0x10fd   : > { %3940 = vpow2.f32 %v2664_v21 }
0x1105   : > { %v3939_v33 = vpop.eup %3938 }
0x1106   : > { %v2666_v35 = vsel %vm1546_vm6, %v3939_v33, 0.0 }
0x1107   : > { %v3941_v22 = vpop.eup %3940  ;;  %2667 = vadd.xlane.f32.xlu0 %v2666_v35 }
0x1108   : > { %v2669_v23 = vsel %vm1546_vm6, %v3941_v22, 0.0 }
0x1109   : > { %2670 = vadd.xlane.f32.xlu1 %v2669_v23  ;;  %v3911_v23 = vld [vmem:[%s4371_s17 + $0x8] sm:$0xff]  }
0x1194   : > { %v2668_v38 = vpop.xlane.xlu0 %2667 }
0x1195   : > { %3942 = vrcp.f32 %v2668_v38 }
0x1196   : > { %v2671_v39 = vpop.xlane.xlu1 %2670 }
0x1197   : > { %3944 = vrcp.f32 %v2671_v39 }
0x119f   : > { %v3943_v40 = vpop.eup %3942 }
0x11a0   : > { %v2674_v42 = vmul.f32 %v3943_v40, %v3939_v33 }
0x11a1   : > { %v3945_v41 = vpop.eup %3944 }
0x11a2   : > { %v2675_v43 = vmul.f32 %v3945_v41, %v3941_v22  ;;  %v3910_v22 = vld [vmem:[%s4371_s17] sm:$0xff]  }
0x11a4   : > { %v2676_v45 = vpack.c.bf16 %v2675_v43, %v2674_v42 }
0x11a6   : > { %3767 = vmatmul.mubr.msk.bf16.vlgmr.msra.gmra.mrb[44].mxu0 %vm1546_vm6, %v2676_v45 }
0x11a7   : > { %3780 = vmatprep.mubr.msk.bf16.mxu0 %vm4058_vm3, %v4057_v7 }
0x1279   : > { %v2715_v46 = vpop.f32.mrb[44].mxu0 }
0x127a   : > { %v3768_v48 = vpop.f32.mrb[45].mxu0 }
0x127b   : > { %v2718_v49 = vpop.f32.mrb[46].mxu0 }
0x127c   : > { %v2722_v50 = vpack.c.bf16 %v2718_v49, %v2715_v46  ;;  %v3769_v51 = vpop.f32.mrb[47].mxu0 }
0x127e   : > { %3773 = vmatmul.mubr.msk.bf16.vlgmr.msra.gmra.mrb[44].mxu1 %vm1498_vm5, %v2722_v50 }
0x127f   : > { %3792 = vmatprep.mubr.msk.bf16.mxu1 %vm4058_vm3, %v4057_v7  ;;  %3785 = vmatpush3.bf16.msra.mxu1 %v3910_v22 }
0x1280   : > { %3786 = vmatprep.subr.bf16.mxu1 %v4057_v7 }
0x1283   : > { %3787 = vmatpush3.bf16.msra.mxu1 %v3911_v23 }
0x1284   : > { %3788 = vmatprep.subr.bf16.mxu1 %v4057_v7 }
0x1287   : > { %3789 = vmatpush3.bf16.msra.mxu1 %v3912_v24 }
0x1288   : > { %3790 = vmatprep.subr.bf16.mxu1 %v4057_v7 }
0x128b   : > { %3791 = vmatpush3.bf16.msra.mxu1 %v3913_v25 }
0x1351   : > { %v2765_v52 = vpop.f32.mrb[44].mxu1 }
0x1352   : > { %v2772_v53 = vadd.f32 %v2765_v52, %v4617_v56  ;;  %v3774_v54 = vpop.f32.mrb[45].mxu1 }
0x1353   : > { %v2768_v55 = vpop.f32.mrb[46].mxu1 }
0x1354   : > { %v2773_v27 = vadd.f32 %v2768_v55, %v4620_v58  ;;  %v3775_v29 = vpop.f32.mrb[47].mxu1  ;;  %v2774_v57 = vadd.f32 %v2772_v53, %v4427_v10 }
0x1355   : > { %v3507_v29 = vld [vmem:[%s1131_s16] ss:$0 sm:$0xff]  ;;  %s4906_s16 = sld [smem:[#allocation9_spill]] }
0x1356   : > { %v2778_v59 = vsel %vm1331_vm4, %v2774_v57, 0.0  ;;  %v2775_v60 = vadd.f32 %v2773_v27, %v4430_v11  ;;  %v3908_v11 = vld [vmem:[%s4357_s14] sm:$0xff]   ;;  %s3962_s14 = sshll.u32 %s4059_s1, 4  ;;  %s3963_s14 = int_to_ptr.vmem [resolvable:$false] %s3962_s14 }
0x1357   : > { %2779 = vadd.xlane.f32.xlu0 %v2778_v59  ;;  %3777 = vmatpush3.bf16.msra.mxu0 %v3908_v11  ;;  %s3964_s19 = scalar_lea.vmem %s3963_s14, 512  ;;  %p3965_p5 = scmp.lt.s32.totalorder %s4713_s29, %s3963_s14 }
0x1358   : > { %v2781_v61 = vsel %vm1331_vm4, %v2775_v60, 0.0  ;;  %3778 = vmatprep.subr.bf16.mxu0 %v4057_v7 }
0x1359   : > { %2782 = vadd.xlane.f32.xlu1 %v2781_v61 }
0x135b   : > { %3779 = vmatpush3.bf16.msra.mxu0 %v3909_v44  ;;  %s3531_s12 = sshll.u32 %s4906_s16, 8 }
0x135c   : > { %s4711_s4 = scalar_lea.hbm %s4911_s26, %s3531_s12 }
0x13e4   : > { %v2780_v62 = vpop.xlane.xlu0 %2779 }
0x13e5   : > { %v2785_v63 = vmul.f32 0.03125, %v2780_v62 }
0x13e6   : > { %v2783_v56 = vpop.xlane.xlu1 %2782 }
0x13e7   : > { %v2787_v0 = vsub.f32 %v2774_v57, %v2785_v63  ;;  %v2786_v1 = vmul.f32 0.03125, %v2783_v56 }
0x13e9   : > { %v2788_v2 = vsub.f32 %v2775_v60, %v2786_v1  ;;  %v2789_v58 = vmul.f32 %v2787_v0, %v2787_v0 }
0x13eb   : > { %v2791_v3 = vsel %vm1331_vm4, %v2789_v58, 0.0  ;;  %v2790_v10 = vmul.f32 %v2788_v2, %v2788_v2 }
0x13ec   : > { %2792 = vadd.xlane.f32.xlu0 %v2791_v3 }
0x13ed   : > { %v2794_v4 = vsel %vm1331_vm4, %v2790_v10, 0.0 }
0x13ee   : > { %2795 = vadd.xlane.f32.xlu1 %v2794_v4 }
0x1479   : > { %v2793_v47 = vpop.xlane.xlu0 %2792 }
0x147a   : > { %v2797_v5 = vmul.f32 0.03125, %v2793_v47 }
0x147b   : > { %v2796_v6 = vpop.xlane.xlu1 %2795 }
0x147c   : > { %v2799_v8 = vadd.f32 1e-12, %v2797_v5  ;;  %v2798_v9 = vmul.f32 0.03125, %v2796_v6 }
0x147e   : > { %3946 = vrsqrt.f32 %v2799_v8  ;;  %v2800_v12 = vadd.f32 1e-12, %v2798_v9 }
0x1480   : > { %3948 = vrsqrt.f32 %v2800_v12 }
0x1488   : > { %v3947_v14 = vpop.eup %3946 }
0x1489   : > { %v2803_v16 = vmul.f32 %v3947_v14, %v2787_v0 }
0x148a   : > { %v3949_v17 = vpop.eup %3948 }
0x148b   : > { %v2811_v18 = vmul.f32 %v3501_v15, %v2803_v16  ;;  %v2804_v13 = vmul.f32 %v3949_v17, %v2788_v2 }
0x148d   : > { %v2812_v20 = vmul.f32 %v3501_v15, %v2804_v13  ;;  %v2819_v21 = vadd.f32 %v3502_v19, %v2811_v18  ;;  %v3513_v13 = vld [vmem:[%s1134_s8] ss:$0 sm:$0xff]  ;;  %s3958_s8 = scalar_lea.vmem %s4713_s29, 256 }
0x148e   : > { %p3959_p1 = scmp.ne.s32.totalorder %s4713_s29, %s3958_s8  ;;  %p3966_p6 = scmp.lt.s32.totalorder %s3964_s19, %s3958_s8 }
0x148f   : > { %v2820_v33 = vadd.f32 %v3502_v19, %v2812_v20 }
0x1490   : > { %p3960_p2 = pnand %p3959_p1, %p4241_p3  ;;  %p3967_p7 = por %p3966_p6, %p3965_p5 }
0x1491   : > { %v2821_v35 = vpack.c.bf16 %v2820_v33, %v2819_v21 }
0x1492   : > { %p3961_p4 = pneg %p3960_p2 }
0x1493   : > { %3781 = vmatmul.mubr.msk.bf16.vlgmr.msra.gmra.mrb[48].mxu0 %vm1331_vm4, %v2821_v35 }
0x1494   : > { %p3968_p8 = pnand %p3967_p7, %p3961_p4 }
0x1566   : > { %v2882_v28 = vpop.f32.mrb[48].mxu0 }
0x1567   : > { %v2883_v30 = vadd.f32 %v3503_v26, %v2882_v28  ;;  %v3782_v31 = vpop.f32.mrb[49].mxu0 }
0x1568   : > { %v2885_v32 = vpop.f32.mrb[50].mxu0 }
0x1569   : > { %v2889_v34 = vmul.f32 %v2883_v30, %v2883_v30  ;;  %v2886_v36 = vadd.f32 %v3503_v26, %v2885_v32  ;;  %v3783_v37 = vpop.f32.mrb[51].mxu0 }
0x156b   : > { %v2891_v38 = vmul.f32 %v2889_v34, %v2883_v30  ;;  %v2890_v39 = vmul.f32 %v2886_v36, %v2886_v36 }
0x156d   : > { %v2893_v40 = vmul.f32 0.044715, %v2891_v38  ;;  %v2892_v41 = vmul.f32 %v2890_v39, %v2886_v36 }
0x156f   : > { %v2895_v42 = vadd.f32 %v2893_v40, %v2883_v30  ;;  %v2894_v7 = vmul.f32 0.044715, %v2892_v41 }
0x1571   : > { %v2897_v43 = vmul.f32 0.7978846, %v2895_v42  ;;  %v2896_v45 = vadd.f32 %v2894_v7, %v2886_v36 }
0x1573   : > { %3950 = vtanh.f32 %v2897_v43  ;;  %v2898_v46 = vmul.f32 0.7978846, %v2896_v45 }
0x1575   : > { %3952 = vtanh.f32 %v2898_v46 }
0x157d   : > { %v3951_v48 = vpop.eup %3950 }
0x157e   : > { %v2901_v49 = vadd.f32 1.0, %v3951_v48 }
0x157f   : > { %v3953_v50 = vpop.eup %3952 }
0x1580   : > { %v2903_v51 = vmul.f32 0.5, %v2901_v49  ;;  %v2902_v52 = vadd.f32 1.0, %v3953_v50 }
0x1582   : > { %v2904_v53 = vmul.f32 0.5, %v2902_v52  ;;  %v2905_v54 = vmul.f32 %v2903_v51, %v2883_v30 }
0x1584   : > { %v2906_v55 = vmul.f32 %v2904_v53, %v2886_v36 }
0x1586   : > { %v2907_v27 = vpack.c.bf16 %v2906_v55, %v2905_v54 }
0x1588   : > { %3793 = vmatmul.mubr.msk.bf16.vlgmr.msra.gmra.mrb[48].mxu1 %vm2947_vm8, %v2907_v27 }
0x165b   : > { %v2985_v57 = vpop.f32.mrb[48].mxu1 }
0x165c   : > { %v2986_v59 = vadd.f32 %v3507_v29, %v2985_v57  ;;  %v3794_v60 = vpop.f32.mrb[49].mxu1 }
0x165d   : > { %v2988_v61 = vpop.f32.mrb[50].mxu1 }
0x165e   : > { %v2989_v62 = vadd.f32 %v3507_v29, %v2988_v61  ;;  %v3795_v63 = vpop.f32.mrb[51].mxu1  ;;  %v2992_v56 = vadd.f32 %v2986_v59, %v2819_v21  ;;  %v3514_v21 = vld [vmem:[%s1137_s18] ss:$0 sm:$0xff]  ;;  %s4913_s18 = sand.u32 1, %s4908_s13  }
0x165f   : > { %s4721_s0 = scalar_lea.sflag [#allocation3], %s4913_s18 }
0x1660   : > { %v2996_v0 = vsel %vm1331_vm4, %v2992_v56, 0.0  ;;  %v2993_v1 = vadd.f32 %v2989_v62, %v2820_v33 }
0x1661   : > { %2997 = vadd.xlane.f32.xlu0 %v2996_v0 }
0x1662   : > { %v2999_v2 = vsel %vm1331_vm4, %v2993_v1, 0.0 }
0x1663   : > { %3000 = vadd.xlane.f32.xlu1 %v2999_v2 }
0x16ee   : > { %v2998_v58 = vpop.xlane.xlu0 %2997 }
0x16ef   : > { %v3002_v3 = vmul.f32 0.03125, %v2998_v58 }
0x16f0   : > { %v3001_v10 = vpop.xlane.xlu1 %3000 }
0x16f1   : > { %v3004_v4 = vsub.f32 %v2992_v56, %v3002_v3  ;;  %v3003_v11 = vmul.f32 0.03125, %v3001_v10 }
0x16f3   : > { %v3005_v44 = vsub.f32 %v2993_v1, %v3003_v11  ;;  %v3006_v47 = vmul.f32 %v3004_v4, %v3004_v4 }
0x16f5   : > { %v3008_v5 = vsel %vm1331_vm4, %v3006_v47, 0.0  ;;  %v3007_v6 = vmul.f32 %v3005_v44, %v3005_v44 }
0x16f6   : > { %3009 = vadd.xlane.f32.xlu0 %v3008_v5 }
0x16f7   : > { %v3011_v8 = vsel %vm1331_vm4, %v3007_v6, 0.0 }
0x16f8   : > { %3012 = vadd.xlane.f32.xlu1 %v3011_v8 }
0x1783   : > { %v3010_v9 = vpop.xlane.xlu0 %3009 }
0x1784   : > { %v3014_v12 = vmul.f32 0.03125, %v3010_v9 }
0x1785   : > { %v3013_v14 = vpop.xlane.xlu1 %3012 }
0x1786   : > { %v3016_v15 = vadd.f32 1e-12, %v3014_v12  ;;  %v3015_v16 = vmul.f32 0.03125, %v3013_v14 }
0x1788   : > { %3954 = vrsqrt.f32 %v3016_v15  ;;  %v3017_v17 = vadd.f32 1e-12, %v3015_v16 }
0x178a   : > { %3956 = vrsqrt.f32 %v3017_v17 }
0x1792   : > { %v3955_v18 = vpop.eup %3954 }
0x1793   : > { %v3020_v19 = vmul.f32 %v3955_v18, %v3004_v4 }
0x1794   : > { %v3957_v20 = vpop.eup %3956 }
0x1795   : > { %v3028_v33 = vmul.f32 %v3513_v13, %v3020_v19  ;;  %v3021_v35 = vmul.f32 %v3957_v20, %v3005_v44 }
0x1797   : > { %v3036_v22 = vadd.f32 %v3514_v21, %v3028_v33  ;;  %v3029_v23 = vmul.f32 %v3513_v13, %v3021_v35 }
0x1799   : > { %3038 = vst.msk [vmem:[%s4382_s11] sm:$0xff] %vm1331_vm4, %v3036_v22  ;;  %v3037_v24 = vadd.f32 %v3514_v21, %v3029_v23 }
0x179b   : > { %3039 = vst.msk [vmem:[%s4382_s11 + $0x8] sm:$0xff] %vm1331_vm4, %v3037_v24 }
0x179c   : > { %3971 = shalt.err (!%p3968_p8)
}
0x179d   : > { %s3972_s11 = scalar_lea.hbm %s4711_s4, 256  ;;  %s3976_s3 = scalar_lea.hbm %s4912_s21, 512 }
0x179e   : > { %p3973_p10 = scmp.ne.s32.totalorder %s4711_s4, %s3972_s11  ;;  %p3977_p13 = scmp.lt.u32.totalorder %s4711_s4, %s4912_s21 }
0x179f   : > { %p3978_p0 = scmp.lt.u32.totalorder %s3976_s3, %s3972_s11  ;;  %p3980_p2 = scmp.lt.u32.totalorder %s3972_s11, %s4711_s4 }
0x17a0   : > { %p3974_p11 = pnand %p3973_p10, %p4241_p3 }
0x17a1   : > { %p3979_p1 = por %p3978_p0, %p3977_p13 }
0x17a2   : > { %p3975_p12 = pneg %p3974_p11 }
0x17a3   : > { %p3981_p4 = por %p3980_p2, %p3979_p1 }
0x17a5   : > { %p3982_p5 = pnand %p3981_p4, %p3975_p12 }
0x17a7   : > { %3985 = shalt.err (!%p3982_p5)
}
0x17a8   : > { %s4060_s17 = smov 128   ;;  %s4061_s27 = smov 8  }
0x17a9   : > { %3796 = dma.vmem_to_hbm [thread:$0]  (%p4241_p3), %s4713_s29, 256, %s4711_s4, %s4721_s0, %s4060_s17, %s4060_s17, %s4061_s27  }
0x17aa PF: > { %s4914_s16 = sld [smem:[#allocation12_spill]]  ;;  %s4915_s10 = sld [smem:[#allocation5_spill]] }
0x17b0   : > { %p3802_p6 = scmp.ge.s32.totalorder %s4914_s16, 2  ;;  %s3069_s7 = sand.u32 1, %s4915_s10  }
0x17b1   : > { %s3070_s13 = scalar_lea.sflag [#allocation3], %s3069_s7 }
0x17b2   : > { %p3799_p7 = pnand %p3802_p6, %p4251_p9 }
0x17b4   : > { %4019 = dma.done.wait (!%p3799_p7), %s3070_s13, 256  }
0x17b5   : > { %4021 = vsyncadd (!%p3799_p7), %s3070_s13, 4294967040  ;;  %s38_s1 = sadd.s32 1, %s4914_s16   ;;  %s4917_s29 = sld [smem:[#allocation6_spill]] }
0x17b6   : > { %p35_p8 = scmp.ge.s32.totalorder %s38_s1, 6   ;;  %s4918_s2 = sld [smem:[#allocation7_spill]] }
0x17b7   : > { %s4919_s6 = sld [smem:[#allocation17_spill]]  ;;  %s4920_s30 = sld [smem:[#allocation10_spill]] }
0x17b8   : > { %s4921_s7 = sld [smem:[#allocation11_spill]]  ;;  %s4922_s3 = sld [smem:[#allocation13_spill]] }
0x17b9   : > { %s4923_s26 = sld [smem:[#allocation15_spill]]  ;;  %37 = sbr.rel (!%p35_p8) target bundleno = 31 (0x1f), region = 243 }
0x17c0   :  { %3075 = vsyncpa [#allocation3], 1 }
0x17c1   :  { %3077 = vsyncpa [#allocation3 + $0x1], 1 }

</bundles_post_ra>
